<compile_context>
chip_gen: v7x
topology: tpu7x:2x2x1
jax: 0.10.0
libtpu: 0.0.40
codegen_flags: <defaults>
</compile_context>

<pallas_src>
import functools

import jax
import jax.numpy as jnp
from jax import lax
from jax.experimental import pallas as pl
from jax.experimental.pallas import tpu as pltpu


def _round_up(a, b):
    return pl.cdiv(a, b) * b


def _default_vmem_limit_bytes():
    # ~100 MiB on 128-MiB-VMEM chips (v5e/v6e); capped at 90% of physical on v7x.
    try:
        cap = pltpu.get_tpu_info().vmem_capacity_bytes
        return int(min(100 * 1024 * 1024, int(cap * 0.9)))
    except Exception:
        return 96 * 1024 * 1024


def _lm_head_kernel(x_ref, wdT_ref, bd_ref, g_ref, b_ref, wdown_ref,
                    wvT_ref, bv_ref, o_ref, p_scr, *, eps):
    # x_ref:     (tm, H)     row tile of flattened features
    # wdT_ref:   (H, H)      dense weight, pre-transposed to (in, out)
    # bd_ref:    (1, H)      dense bias
    # g_ref:     (1, H)      LayerNorm gamma
    # b_ref:     (1, H)      LayerNorm beta
    # wdown_ref: (H, P)      LinearTranspose weight (used as z @ W)
    # wvT_ref:   (P, tn)     vocab-projection weight tile, pre-transposed (in, out)
    # bv_ref:    (1, tn)     vocab bias tile
    # o_ref:     (tm, tn)    output tile
    # p_scr:     (tm, P)     scratch holding the primitive activations for this row tile

    # The dense -> GELU -> LayerNorm -> down-project path only depends on the row
    # tile; compute it once (first vocab tile) and reuse for every vocab tile.
    @pl.when(pl.program_id(1) == 0)
    def _compute_primitive():
        x = x_ref[...]
        # dense: x @ WdT  (WdT already (in, out) -> plain MXU matmul, no transpose)
        h = jnp.dot(x.astype(wdT_ref.dtype), wdT_ref[...],
                    preferred_element_type=jnp.float32)
        h = h + bd_ref[...].astype(jnp.float32)

        # exact GELU (erf-based, matches torch.nn.functional.gelu default)
        h = 0.5 * h * (1.0 + lax.erf(h * 0.7071067811865476))

        # LayerNorm over the hidden axis (biased variance), f32 math
        mean = jnp.mean(h, axis=-1, keepdims=True)
        centered = h - mean
        var = jnp.mean(centered * centered, axis=-1, keepdims=True)
        z = centered * lax.rsqrt(var + eps)
        z = z * g_ref[...].astype(jnp.float32) + b_ref[...].astype(jnp.float32)

        # down_project(..., transpose=True): z @ W_down -> (tm, P)
        p = jnp.dot(z.astype(wdown_ref.dtype), wdown_ref[...],
                    preferred_element_type=jnp.float32)
        # Cast once here (p_scr dtype == vocab-matmul input dtype) instead of per-j.
        p_scr[...] = p.astype(p_scr.dtype)

    # vocab projection for this vocab tile: p @ WvT_tile  (already (P, tn) -> no transpose)
    out = jnp.dot(p_scr[...], wvT_ref[...], preferred_element_type=jnp.float32)
    out = out + bv_ref[...].astype(jnp.float32)
    o_ref[...] = out.astype(o_ref.dtype)


def prepare_lm_head_params(params, *, tn=512):
    """One-time parameter preparation (do NOT call per forward pass).

    - Pads the vocab dimension up to a multiple of tn (vocab tile) once.
    - Pre-transposes the vocab weight to (P, V_pad) and the dense weight to
      (H_in, H_out) so the kernel runs plain, transpose-free MXU matmuls.
    """
    wd = jnp.asarray(params["dense_w"])      # (H, H)  torch layout (out, in)
    bd = jnp.asarray(params["dense_b"])      # (H,)
    gamma = jnp.asarray(params["ln_w"])      # (H,)
    beta = jnp.asarray(params["ln_b"])       # (H,)
    wdown = jnp.asarray(params["down_w"])    # (H, P)  LinearTranspose weight
    wv = jnp.asarray(params["vocab_w"])      # (V, P)  torch layout (out, in)
    bv = jnp.asarray(params["vocab_b"])      # (V,)

    H = wd.shape[0]
    V, P = wv.shape

    tn = int(min(tn, _round_up(V, 128)))
    V_pad = int(_round_up(V, tn))

    wvT = wv.T                               # (P, V)
    if V_pad != V:
        wvT = jnp.pad(wvT, ((0, 0), (0, V_pad - V)))
        bv = jnp.pad(bv, (0, V_pad - V))

    return {
        "dense_wT": wd.T,                    # (H_in, H_out)
        "dense_b": bd.reshape(1, H),
        "ln_w": gamma.reshape(1, H),
        "ln_b": beta.reshape(1, H),
        "down_w": wdown,                     # (H, P)
        "vocab_wT": wvT,                     # (P, V_pad)
        "vocab_b": bv.reshape(1, V_pad),
        "hidden": int(H),
        "num_primitive": int(P),
        "vocab_size": int(V),
        "tn": int(tn),
    }


def roberta_assembled_lm_head(features, prepared, *, eps=1e-5, tm=512,
                              trim_vocab=True, vmem_limit_bytes=None):
    """features: (..., H) float.  `prepared` comes from prepare_lm_head_params.

    Returns (..., V) logits (or (..., V_pad) when trim_vocab=False — keep the vocab
    axis padded downstream to avoid the per-call column-slice HBM traffic).
    """
    H = prepared["hidden"]
    P = prepared["num_primitive"]
    V = prepared["vocab_size"]
    tn = prepared["tn"]
    V_pad = prepared["vocab_wT"].shape[1]

    orig_shape = features.shape
    assert orig_shape[-1] == H
    x = features.reshape(-1, H)
    M = x.shape[0]

    # --- row tile selection (keep (8,128) alignment; megacore-friendly for small M) ---
    M_al = int(_round_up(M, 8))
    tm = int(min(tm, M_al))
    if M_al >= 16 and M_al < 2 * tm:
        # Keep >= 2 row tiles so both TensorCores get work on the "parallel" axis.
        tm = int(_round_up(pl.cdiv(M_al, 2), 8))
    M_pad = int(_round_up(M, tm))
    if M_pad != M:
        x = jnp.pad(x, ((0, M_pad - M), (0, 0)))

    grid = (M_pad // tm, V_pad // tn)

    wdT = prepared["dense_wT"]
    bd2 = prepared["dense_b"]
    g2 = prepared["ln_w"]
    b2 = prepared["ln_b"]
    wdown = prepared["down_w"]
    wvT = prepared["vocab_wT"]
    bv2 = prepared["vocab_b"]

    # Scratch dtype == vocab-matmul input dtype (bf16 when weights are bf16).
    p_dtype = wvT.dtype

    if vmem_limit_bytes is None:
        vmem_limit_bytes = _default_vmem_limit_bytes()

    kernel = functools.partial(_lm_head_kernel, eps=float(eps))

    itemsize = jnp.dtype(x.dtype).itemsize
    w_itemsize = jnp.dtype(wvT.dtype).itemsize
    flops = 2 * M_pad * (H * H + H * P) + 2 * M_pad * V_pad * P
    bytes_accessed = (
        M_pad * H * itemsize                           # x
        + M_pad * V_pad * itemsize                     # out
        + (H * H + H * P + 4 * H) * w_itemsize         # resident weights / biases
        + grid[0] * (V_pad * P + V_pad) * w_itemsize)  # streamed vocab weight per row tile
    cost = pl.CostEstimate(
        flops=int(flops),
        transcendentals=int(M_pad * H),
        bytes_accessed=int(bytes_accessed),
    )

    def _run(use_pipeline_modes):
        resident_kw = {}
        wv_kw = {}
        if use_pipeline_modes:
            # Constant-index blocks are fetched exactly once -> single-buffer them.
            resident_kw = dict(pipeline_mode=pl.Buffered(1))
            # Deeper buffering on the streamed Wv tile only pays once per-tile
            # compute is comparable to its DMA (large tm) and there are enough tiles.
            if grid[1] >= 3 and tm >= 512:
                wv_kw = dict(pipeline_mode=pl.Buffered(3))

        in_specs = [
            pl.BlockSpec((tm, H), lambda i, j: (i, 0)),                  # x rows (const over j)
            pl.BlockSpec((H, H), lambda i, j: (0, 0), **resident_kw),    # WdT (resident)
            pl.BlockSpec((1, H), lambda i, j: (0, 0), **resident_kw),    # bd
            pl.BlockSpec((1, H), lambda i, j: (0, 0), **resident_kw),    # gamma
            pl.BlockSpec((1, H), lambda i, j: (0, 0), **resident_kw),    # beta
            pl.BlockSpec((H, P), lambda i, j: (0, 0), **resident_kw),    # W_down (resident)
            pl.BlockSpec((P, tn), lambda i, j: (0, j), **wv_kw),         # WvT tile (streams over j)
            pl.BlockSpec((1, tn), lambda i, j: (0, j)),                  # bv tile
        ]

        return pl.pallas_call(
            kernel,
            out_shape=jax.ShapeDtypeStruct((M_pad, V_pad), features.dtype),
            grid_spec=pltpu.PrefetchScalarGridSpec(
                num_scalar_prefetch=0,
                grid=grid,
                in_specs=in_specs,
                out_specs=pl.BlockSpec((tm, tn), lambda i, j: (i, j)),
                scratch_shapes=[pltpu.VMEM((tm, P), p_dtype)],
            ),
            compiler_params=pltpu.CompilerParams(
                dimension_semantics=("parallel", "arbitrary"),
                vmem_limit_bytes=int(vmem_limit_bytes),
            ),
            cost_estimate=cost,
        )(x, wdT, bd2, g2, b2, wdown, wvT, bv2)

    try:
        out = _run(True)
    except Exception:
        # Fallback for JAX/Mosaic builds that reject pipeline_mode hints.
        out = _run(False)

    out = out[:M]                 # row slice (depends on runtime M, unavoidable)
    if trim_vocab and V_pad != V:
        out = out[:, :V]          # optional: skip by keeping the padded vocab downstream
    return out.reshape(*orig_shape[:-1], out.shape[-1])


def _reference(features, params, eps=1e-5):
    """Pure-JAX reference for correctness checking (PyTorch semantics)."""
    x = features
    h = x @ params["dense_w"].T + params["dense_b"]
    h = 0.5 * h * (1.0 + lax.erf(h / jnp.sqrt(2.0)))
    mean = jnp.mean(h, axis=-1, keepdims=True)
    var = jnp.mean((h - mean) ** 2, axis=-1, keepdims=True)
    z = (h - mean) * lax.rsqrt(var + eps) * params["ln_w"] + params["ln_b"]
    p = z @ params["down_w"]
    return p @ params["vocab_w"].T + params["vocab_b"]


if __name__ == "__main__":
    # Small synthetic config: hidden=32, num_primitive=16, vocab=256, batch=2, seq=8
    B, S, H, P, V = 2, 8, 32, 16, 256
    eps = 1e-5

    key = jax.random.PRNGKey(0)
    ks = jax.random.split(key, 8)

    params = {
        "dense_w": jax.random.normal(ks[0], (H, H), jnp.float32) * 0.05,
        "dense_b": jax.random.normal(ks[1], (H,), jnp.float32) * 0.05,
        "ln_w": 1.0 + 0.1 * jax.random.normal(ks[2], (H,), jnp.float32),
        "ln_b": 0.05 * jax.random.normal(ks[3], (H,), jnp.float32),
        "down_w": jax.random.normal(ks[4], (H, P), jnp.float32) * 0.05,
        "vocab_w": jax.random.normal(ks[5], (V, P), jnp.float32) * 0.05,
        "vocab_b": jax.random.normal(ks[6], (V,), jnp.float32) * 0.05,
    }
    features = jax.random.normal(ks[7], (B, S, H), jnp.float32)

    # One-time parameter prep (padding + weight transposes happen here, not per call).
    prepared = prepare_lm_head_params(params, tn=128)

    # Run 1: multiple row and vocab tiles (exercises p-scratch reuse across the vocab
    # axis and the megacore row-tile split).
    out = roberta_assembled_lm_head(features, prepared, eps=eps, tm=256)
    out = jax.block_until_ready(out)
    ref = _reference(features, params, eps=eps)
    assert out.shape == (B, S, V), out.shape
    assert jnp.allclose(out, ref, atol=1e-4, rtol=1e-4), (
        float(jnp.max(jnp.abs(out - ref))))

    # Run 2: ragged row count (exercises row padding + multiple row tiles).
    feats2 = features[:, :5, :]                     # M = 10 rows, padded to 16
    out2 = roberta_assembled_lm_head(feats2, prepared, eps=eps, tm=8)
    out2 = jax.block_until_ready(out2)
    ref2 = _reference(feats2, params, eps=eps)
    assert out2.shape == (B, 5, V), out2.shape
    assert jnp.allclose(out2, ref2, atol=1e-4, rtol=1e-4), (
        float(jnp.max(jnp.abs(out2 - ref2))))

    print("KERNEL_OK")
</pallas_src>

<mosaic_0001>
module attributes {stable_mosaic.version = 11 : i64} {
  func.func @_lm_head_kernel(%arg0: i32, %arg1: i32, %arg2: memref<8x32xf32, #tpu.memory_space<vmem>>, %arg3: memref<32x32xf32, #tpu.memory_space<vmem>>, %arg4: memref<1x32xf32, #tpu.memory_space<vmem>>, %arg5: memref<1x32xf32, #tpu.memory_space<vmem>>, %arg6: memref<1x32xf32, #tpu.memory_space<vmem>>, %arg7: memref<32x16xf32, #tpu.memory_space<vmem>>, %arg8: memref<16x128xf32, #tpu.memory_space<vmem>>, %arg9: memref<1x128xf32, #tpu.memory_space<vmem>>, %arg10: memref<8x128xf32, #tpu.memory_space<vmem>>, %arg11: memref<8x16xf32, #tpu.memory_space<vmem>>) attributes {dimension_semantics = [#tpu.dimension_semantics<parallel>, #tpu.dimension_semantics<arbitrary>], iteration_bounds = array<i64: 2, 2>, scalar_prefetch = 0 : i64, scratch_operands = 1 : i64, tpu.core_type = #tpu.core_type<tc>, window_params = [{transform_indices = @transform_0, window_bounds = array<i64: 8, 32>}, {pipeline_mode = #tpu.pipeline_mode<synchronous>, transform_indices = @transform_1, window_bounds = array<i64: 32, 32>}, {pipeline_mode = #tpu.pipeline_mode<synchronous>, transform_indices = @transform_2, window_bounds = array<i64: 1, 32>}, {pipeline_mode = #tpu.pipeline_mode<synchronous>, transform_indices = @transform_3, window_bounds = array<i64: 1, 32>}, {pipeline_mode = #tpu.pipeline_mode<synchronous>, transform_indices = @transform_4, window_bounds = array<i64: 1, 32>}, {pipeline_mode = #tpu.pipeline_mode<synchronous>, transform_indices = @transform_5, window_bounds = array<i64: 32, 16>}, {transform_indices = @transform_6, window_bounds = array<i64: 16, 128>}, {transform_indices = @transform_7, window_bounds = array<i64: 1, 128>}, {transform_indices = @transform_8, window_bounds = array<i64: 8, 128>}]} {
    %c0_i32 = arith.constant 0 : i32
    %0 = arith.cmpi eq, %arg1, %c0_i32 : i32
    %1 = arith.extui %0 : i1 to i32
    %c0_i32_0 = arith.constant 0 : i32
    %2 = arith.cmpi ne, %1, %c0_i32_0 : i32
    scf.if %2 {
      %c0_8 = arith.constant 0 : index
      %c0_9 = arith.constant 0 : index
      %10 = vector.load %arg2[%c0_8, %c0_9] : memref<8x32xf32, #tpu.memory_space<vmem>>, vector<8x32xf32>
      %c0_10 = arith.constant 0 : index
      %c0_11 = arith.constant 0 : index
      %11 = vector.load %arg3[%c0_10, %c0_11] : memref<32x32xf32, #tpu.memory_space<vmem>>, vector<32x32xf32>
      %cst_12 = arith.constant dense<0.000000e+00> : vector<8x32xf32>
      %12 = tpu.matmul %10, %11, %cst_12 {dimension_numbers = #tpu.dot_dimension_numbers<[1], [0], [0], [1], [0, 0, 1, 1], [], []>} : vector<8x32xf32>, vector<32x32xf32>, vector<8x32xf32> -> vector<8x32xf32>
      %c0_13 = arith.constant 0 : index
      %c0_14 = arith.constant 0 : index
      %13 = vector.load %arg4[%c0_13, %c0_14] : memref<1x32xf32, #tpu.memory_space<vmem>>, vector<1x32xf32>
      %14 = vector.broadcast %13 : vector<1x32xf32> to vector<8x32xf32>
      %15 = arith.addf %12, %14 : vector<8x32xf32>
      %cst_15 = arith.constant 5.000000e-01 : f32
      %16 = vector.broadcast %cst_15 : f32 to vector<8x32xf32>
      %17 = arith.mulf %16, %15 : vector<8x32xf32>
      %cst_16 = arith.constant 0.707106769 : f32
      %18 = vector.broadcast %cst_16 : f32 to vector<8x32xf32>
      %19 = arith.mulf %15, %18 : vector<8x32xf32>
      %20 = math.erf %19 : vector<8x32xf32>
      %cst_17 = arith.constant 1.000000e+00 : f32
      %21 = vector.broadcast %cst_17 : f32 to vector<8x32xf32>
      %22 = arith.addf %21, %20 : vector<8x32xf32>
      %23 = arith.mulf %17, %22 : vector<8x32xf32>
      %cst_18 = arith.constant dense<0.000000e+00> : vector<8xf32>
      %24 = vector.multi_reduction <add>, %23, %cst_18 [1] : vector<8x32xf32> to vector<8xf32>
      %25 = vector.shape_cast %24 : vector<8xf32> to vector<8x1xf32>
      %cst_19 = arith.constant 3.200000e+01 : f32
      %26 = vector.broadcast %cst_19 : f32 to vector<8x1xf32>
      %27 = arith.divf %25, %26 : vector<8x1xf32>
      %28 = vector.broadcast %27 : vector<8x1xf32> to vector<8x32xf32>
      %29 = arith.subf %23, %28 : vector<8x32xf32>
      %30 = arith.mulf %29, %29 : vector<8x32xf32>
      %cst_20 = arith.constant dense<0.000000e+00> : vector<8xf32>
      %31 = vector.multi_reduction <add>, %30, %cst_20 [1] : vector<8x32xf32> to vector<8xf32>
      %32 = vector.shape_cast %31 : vector<8xf32> to vector<8x1xf32>
      %cst_21 = arith.constant 3.200000e+01 : f32
      %33 = vector.broadcast %cst_21 : f32 to vector<8x1xf32>
      %34 = arith.divf %32, %33 : vector<8x1xf32>
      %cst_22 = arith.constant 9.99999974E-6 : f32
      %35 = vector.broadcast %cst_22 : f32 to vector<8x1xf32>
      %36 = arith.addf %34, %35 : vector<8x1xf32>
      %37 = math.rsqrt %36 : vector<8x1xf32>
      %38 = vector.broadcast %37 : vector<8x1xf32> to vector<8x32xf32>
      %39 = arith.mulf %29, %38 : vector<8x32xf32>
      %c0_23 = arith.constant 0 : index
      %c0_24 = arith.constant 0 : index
      %40 = vector.load %arg5[%c0_23, %c0_24] : memref<1x32xf32, #tpu.memory_space<vmem>>, vector<1x32xf32>
      %41 = vector.broadcast %40 : vector<1x32xf32> to vector<8x32xf32>
      %42 = arith.mulf %39, %41 : vector<8x32xf32>
      %c0_25 = arith.constant 0 : index
      %c0_26 = arith.constant 0 : index
      %43 = vector.load %arg6[%c0_25, %c0_26] : memref<1x32xf32, #tpu.memory_space<vmem>>, vector<1x32xf32>
      %44 = vector.broadcast %43 : vector<1x32xf32> to vector<8x32xf32>
      %45 = arith.addf %42, %44 : vector<8x32xf32>
      %c0_27 = arith.constant 0 : index
      %c0_28 = arith.constant 0 : index
      %46 = vector.load %arg7[%c0_27, %c0_28] : memref<32x16xf32, #tpu.memory_space<vmem>>, vector<32x16xf32>
      %cst_29 = arith.constant dense<0.000000e+00> : vector<8x16xf32>
      %47 = tpu.matmul %45, %46, %cst_29 {dimension_numbers = #tpu.dot_dimension_numbers<[1], [0], [0], [1], [0, 0, 1, 1], [], []>} : vector<8x32xf32>, vector<32x16xf32>, vector<8x16xf32> -> vector<8x16xf32>
      %c0_30 = arith.constant 0 : index
      %c0_31 = arith.constant 0 : index
      %48 = vector.load %arg11[%c0_30, %c0_31] : memref<8x16xf32, #tpu.memory_space<vmem>>, vector<8x16xf32>
      tpu.vector_store %arg11[%c0_30, %c0_31], %47 {strides = array<i32>} : memref<8x16xf32, #tpu.memory_space<vmem>>, vector<8x16xf32>,
    } else {
    }
    %c0 = arith.constant 0 : index
    %c0_1 = arith.constant 0 : index
    %3 = vector.load %arg11[%c0, %c0_1] : memref<8x16xf32, #tpu.memory_space<vmem>>, vector<8x16xf32>
    %c0_2 = arith.constant 0 : index
    %c0_3 = arith.constant 0 : index
    %4 = vector.load %arg8[%c0_2, %c0_3] : memref<16x128xf32, #tpu.memory_space<vmem>>, vector<16x128xf32>
    %cst = arith.constant dense<0.000000e+00> : vector<8x128xf32>
    %5 = tpu.matmul %3, %4, %cst {dimension_numbers = #tpu.dot_dimension_numbers<[1], [0], [0], [1], [0, 0, 1, 1], [], []>} : vector<8x16xf32>, vector<16x128xf32>, vector<8x128xf32> -> vector<8x128xf32>
    %c0_4 = arith.constant 0 : index
    %c0_5 = arith.constant 0 : index
    %6 = vector.load %arg9[%c0_4, %c0_5] : memref<1x128xf32, #tpu.memory_space<vmem>>, vector<1x128xf32>
    %7 = vector.broadcast %6 : vector<1x128xf32> to vector<8x128xf32>
    %8 = arith.addf %5, %7 : vector<8x128xf32>
    %c0_6 = arith.constant 0 : index
    %c0_7 = arith.constant 0 : index
    %9 = vector.load %arg10[%c0_6, %c0_7] : memref<8x128xf32, #tpu.memory_space<vmem>>, vector<8x128xf32>
    tpu.vector_store %arg10[%c0_6, %c0_7], %8 {strides = array<i32>} : memref<8x128xf32, #tpu.memory_space<vmem>>, vector<8x128xf32>,
    return
  }
  func.func @transform_0(%arg0: i32, %arg1: i32) -> (i32, i32) {
    %c0_i32 = arith.constant 0 : i32
    %c0_i32_0 = arith.constant 0 : i32
    return %arg0, %c0_i32 : i32, i32
  }
  func.func @transform_1(%arg0: i32, %arg1: i32) -> (i32, i32) {
    %c0_i32 = arith.constant 0 : i32
    %c0_i32_0 = arith.constant 0 : i32
    %c0_i32_1 = arith.constant 0 : i32
    return %c0_i32, %c0_i32_0 : i32, i32
  }
  func.func @transform_2(%arg0: i32, %arg1: i32) -> (i32, i32) {
    %c0_i32 = arith.constant 0 : i32
    %c0_i32_0 = arith.constant 0 : i32
    %c0_i32_1 = arith.constant 0 : i32
    return %c0_i32, %c0_i32_0 : i32, i32
  }
  func.func @transform_3(%arg0: i32, %arg1: i32) -> (i32, i32) {
    %c0_i32 = arith.constant 0 : i32
    %c0_i32_0 = arith.constant 0 : i32
    %c0_i32_1 = arith.constant 0 : i32
    return %c0_i32, %c0_i32_0 : i32, i32
  }
  func.func @transform_4(%arg0: i32, %arg1: i32) -> (i32, i32) {
    %c0_i32 = arith.constant 0 : i32
    %c0_i32_0 = arith.constant 0 : i32
    %c0_i32_1 = arith.constant 0 : i32
    return %c0_i32, %c0_i32_0 : i32, i32
  }
  func.func @transform_5(%arg0: i32, %arg1: i32) -> (i32, i32) {
    %c0_i32 = arith.constant 0 : i32
    %c0_i32_0 = arith.constant 0 : i32
    %c0_i32_1 = arith.constant 0 : i32
    return %c0_i32, %c0_i32_0 : i32, i32
  }
  func.func @transform_6(%arg0: i32, %arg1: i32) -> (i32, i32) {
    %c0_i32 = arith.constant 0 : i32
    %c0_i32_0 = arith.constant 0 : i32
    return %c0_i32, %arg1 : i32, i32
  }
  func.func @transform_7(%arg0: i32, %arg1: i32) -> (i32, i32) {
    %c0_i32 = arith.constant 0 : i32
    %c0_i32_0 = arith.constant 0 : i32
    return %c0_i32, %arg1 : i32, i32
  }
  func.func @transform_8(%arg0: i32, %arg1: i32) -> (i32, i32) {
    %c0_i32 = arith.constant 0 : i32
    return %arg0, %arg1 : i32, i32
  }
}

module attributes {stable_mosaic.version = 11 : i64} {
  func.func @_lm_head_kernel(%arg0: i32, %arg1: i32, %arg2: memref<8x32xf32, #tpu.memory_space<vmem>>, %arg3: memref<32x32xf32, #tpu.memory_space<vmem>>, %arg4: memref<1x32xf32, #tpu.memory_space<vmem>>, %arg5: memref<1x32xf32, #tpu.memory_space<vmem>>, %arg6: memref<1x32xf32, #tpu.memory_space<vmem>>, %arg7: memref<32x16xf32, #tpu.memory_space<vmem>>, %arg8: memref<16x128xf32, #tpu.memory_space<vmem>>, %arg9: memref<1x128xf32, #tpu.memory_space<vmem>>, %arg10: memref<8x128xf32, #tpu.memory_space<vmem>>, %arg11: memref<8x16xf32, #tpu.memory_space<vmem>>) attributes {dimension_semantics = [#tpu.dimension_semantics<parallel>, #tpu.dimension_semantics<arbitrary>], iteration_bounds = array<i64: 2, 2>, scalar_prefetch = 0 : i64, scratch_operands = 1 : i64, tpu.core_type = #tpu.core_type<tc>, window_params = [{transform_indices = @transform_0, window_bounds = array<i64: 8, 32>}, {pipeline_mode = #tpu.pipeline_mode<synchronous>, transform_indices = @transform_1, window_bounds = array<i64: 32, 32>}, {pipeline_mode = #tpu.pipeline_mode<synchronous>, transform_indices = @transform_2, window_bounds = array<i64: 1, 32>}, {pipeline_mode = #tpu.pipeline_mode<synchronous>, transform_indices = @transform_3, window_bounds = array<i64: 1, 32>}, {pipeline_mode = #tpu.pipeline_mode<synchronous>, transform_indices = @transform_4, window_bounds = array<i64: 1, 32>}, {pipeline_mode = #tpu.pipeline_mode<synchronous>, transform_indices = @transform_5, window_bounds = array<i64: 32, 16>}, {transform_indices = @transform_6, window_bounds = array<i64: 16, 128>}, {transform_indices = @transform_7, window_bounds = array<i64: 1, 128>}, {transform_indices = @transform_8, window_bounds = array<i64: 8, 128>}]} {
    %c0_i32 = arith.constant 0 : i32
    %0 = arith.cmpi eq, %arg1, %c0_i32 : i32
    %1 = arith.extui %0 : i1 to i32
    %c0_i32_0 = arith.constant 0 : i32
    %2 = arith.cmpi ne, %1, %c0_i32_0 : i32
    scf.if %2 {
      %c0_8 = arith.constant 0 : index
      %c0_9 = arith.constant 0 : index
      %10 = vector.load %arg2[%c0_8, %c0_9] : memref<8x32xf32, #tpu.memory_space<vmem>>, vector<8x32xf32>
      %c0_10 = arith.constant 0 : index
      %c0_11 = arith.constant 0 : index
      %11 = vector.load %arg3[%c0_10, %c0_11] : memref<32x32xf32, #tpu.memory_space<vmem>>, vector<32x32xf32>
      %cst_12 = arith.constant dense<0.000000e+00> : vector<8x32xf32>
      %12 = tpu.matmul %10, %11, %cst_12 {dimension_numbers = #tpu.dot_dimension_numbers<[1], [0], [0], [1], [0, 0, 1, 1], [], []>} : vector<8x32xf32>, vector<32x32xf32>, vector<8x32xf32> -> vector<8x32xf32>
      %c0_13 = arith.constant 0 : index
      %c0_14 = arith.constant 0 : index
      %13 = vector.load %arg4[%c0_13, %c0_14] : memref<1x32xf32, #tpu.memory_space<vmem>>, vector<1x32xf32>
      %14 = vector.broadcast %13 : vector<1x32xf32> to vector<8x32xf32>
      %15 = arith.addf %12, %14 : vector<8x32xf32>
      %cst_15 = arith.constant 5.000000e-01 : f32
      %16 = vector.broadcast %cst_15 : f32 to vector<8x32xf32>
      %17 = arith.mulf %16, %15 : vector<8x32xf32>
      %cst_16 = arith.constant 0.707106769 : f32
      %18 = vector.broadcast %cst_16 : f32 to vector<8x32xf32>
      %19 = arith.mulf %15, %18 : vector<8x32xf32>
      %20 = math.erf %19 : vector<8x32xf32>
      %cst_17 = arith.constant 1.000000e+00 : f32
      %21 = vector.broadcast %cst_17 : f32 to vector<8x32xf32>
      %22 = arith.addf %21, %20 : vector<8x32xf32>
      %23 = arith.mulf %17, %22 : vector<8x32xf32>
      %cst_18 = arith.constant dense<0.000000e+00> : vector<8xf32>
      %24 = vector.multi_reduction <add>, %23, %cst_18 [1] : vector<8x32xf32> to vector<8xf32>
      %25 = vector.shape_cast %24 : vector<8xf32> to vector<8x1xf32>
      %cst_19 = arith.constant 3.200000e+01 : f32
      %26 = vector.broadcast %cst_19 : f32 to vector<8x1xf32>
      %27 = arith.divf %25, %26 : vector<8x1xf32>
      %28 = vector.broadcast %27 : vector<8x1xf32> to vector<8x32xf32>
      %29 = arith.subf %23, %28 : vector<8x32xf32>
      %30 = arith.mulf %29, %29 : vector<8x32xf32>
      %cst_20 = arith.constant dense<0.000000e+00> : vector<8xf32>
      %31 = vector.multi_reduction <add>, %30, %cst_20 [1] : vector<8x32xf32> to vector<8xf32>
      %32 = vector.shape_cast %31 : vector<8xf32> to vector<8x1xf32>
      %cst_21 = arith.constant 3.200000e+01 : f32
      %33 = vector.broadcast %cst_21 : f32 to vector<8x1xf32>
      %34 = arith.divf %32, %33 : vector<8x1xf32>
      %cst_22 = arith.constant 9.99999974E-6 : f32
      %35 = vector.broadcast %cst_22 : f32 to vector<8x1xf32>
      %36 = arith.addf %34, %35 : vector<8x1xf32>
      %37 = math.rsqrt %36 : vector<8x1xf32>
      %38 = vector.broadcast %37 : vector<8x1xf32> to vector<8x32xf32>
      %39 = arith.mulf %29, %38 : vector<8x32xf32>
      %c0_23 = arith.constant 0 : index
      %c0_24 = arith.constant 0 : index
      %40 = vector.load %arg5[%c0_23, %c0_24] : memref<1x32xf32, #tpu.memory_space<vmem>>, vector<1x32xf32>
      %41 = vector.broadcast %40 : vector<1x32xf32> to vector<8x32xf32>
      %42 = arith.mulf %39, %41 : vector<8x32xf32>
      %c0_25 = arith.constant 0 : index
      %c0_26 = arith.constant 0 : index
      %43 = vector.load %arg6[%c0_25, %c0_26] : memref<1x32xf32, #tpu.memory_space<vmem>>, vector<1x32xf32>
      %44 = vector.broadcast %43 : vector<1x32xf32> to vector<8x32xf32>
      %45 = arith.addf %42, %44 : vector<8x32xf32>
      %c0_27 = arith.constant 0 : index
      %c0_28 = arith.constant 0 : index
      %46 = vector.load %arg7[%c0_27, %c0_28] : memref<32x16xf32, #tpu.memory_space<vmem>>, vector<32x16xf32>
      %cst_29 = arith.constant dense<0.000000e+00> : vector<8x16xf32>
      %47 = tpu.matmul %45, %46, %cst_29 {dimension_numbers = #tpu.dot_dimension_numbers<[1], [0], [0], [1], [0, 0, 1, 1], [], []>} : vector<8x32xf32>, vector<32x16xf32>, vector<8x16xf32> -> vector<8x16xf32>
      %c0_30 = arith.constant 0 : index
      %c0_31 = arith.constant 0 : index
      %48 = vector.load %arg11[%c0_30, %c0_31] : memref<8x16xf32, #tpu.memory_space<vmem>>, vector<8x16xf32>
      tpu.vector_store %arg11[%c0_30, %c0_31], %47 {strides = array<i32>} : memref<8x16xf32, #tpu.memory_space<vmem>>, vector<8x16xf32>,
    } else {
    }
    %c0 = arith.constant 0 : index
    %c0_1 = arith.constant 0 : index
    %3 = vector.load %arg11[%c0, %c0_1] : memref<8x16xf32, #tpu.memory_space<vmem>>, vector<8x16xf32>
    %c0_2 = arith.constant 0 : index
    %c0_3 = arith.constant 0 : index
    %4 = vector.load %arg8[%c0_2, %c0_3] : memref<16x128xf32, #tpu.memory_space<vmem>>, vector<16x128xf32>
    %cst = arith.constant dense<0.000000e+00> : vector<8x128xf32>
    %5 = tpu.matmul %3, %4, %cst {dimension_numbers = #tpu.dot_dimension_numbers<[1], [0], [0], [1], [0, 0, 1, 1], [], []>} : vector<8x16xf32>, vector<16x128xf32>, vector<8x128xf32> -> vector<8x128xf32>
    %c0_4 = arith.constant 0 : index
    %c0_5 = arith.constant 0 : index
    %6 = vector.load %arg9[%c0_4, %c0_5] : memref<1x128xf32, #tpu.memory_space<vmem>>, vector<1x128xf32>
    %7 = vector.broadcast %6 : vector<1x128xf32> to vector<8x128xf32>
    %8 = arith.addf %5, %7 : vector<8x128xf32>
    %c0_6 = arith.constant 0 : index
    %c0_7 = arith.constant 0 : index
    %9 = vector.load %arg10[%c0_6, %c0_7] : memref<8x128xf32, #tpu.memory_space<vmem>>, vector<8x128xf32>
    tpu.vector_store %arg10[%c0_6, %c0_7], %8 {strides = array<i32>} : memref<8x128xf32, #tpu.memory_space<vmem>>, vector<8x128xf32>,
    return
  }
  func.func @transform_0(%arg0: i32, %arg1: i32) -> (i32, i32) {
    %c0_i32 = arith.constant 0 : i32
    %c0_i32_0 = arith.constant 0 : i32
    return %arg0, %c0_i32 : i32, i32
  }
  func.func @transform_1(%arg0: i32, %arg1: i32) -> (i32, i32) {
    %c0_i32 = arith.constant 0 : i32
    %c0_i32_0 = arith.constant 0 : i32
    %c0_i32_1 = arith.constant 0 : i32
    return %c0_i32, %c0_i32_0 : i32, i32
  }
  func.func @transform_2(%arg0: i32, %arg1: i32) -> (i32, i32) {
    %c0_i32 = arith.constant 0 : i32
    %c0_i32_0 = arith.constant 0 : i32
    %c0_i32_1 = arith.constant 0 : i32
    return %c0_i32, %c0_i32_0 : i32, i32
  }
  func.func @transform_3(%arg0: i32, %arg1: i32) -> (i32, i32) {
    %c0_i32 = arith.constant 0 : i32
    %c0_i32_0 = arith.constant 0 : i32
    %c0_i32_1 = arith.constant 0 : i32
    return %c0_i32, %c0_i32_0 : i32, i32
  }
  func.func @transform_4(%arg0: i32, %arg1: i32) -> (i32, i32) {
    %c0_i32 = arith.constant 0 : i32
    %c0_i32_0 = arith.constant 0 : i32
    %c0_i32_1 = arith.constant 0 : i32
    return %c0_i32, %c0_i32_0 : i32, i32
  }
  func.func @transform_5(%arg0: i32, %arg1: i32) -> (i32, i32) {
    %c0_i32 = arith.constant 0 : i32
    %c0_i32_0 = arith.constant 0 : i32
    %c0_i32_1 = arith.constant 0 : i32
    return %c0_i32, %c0_i32_0 : i32, i32
  }
  func.func @transform_6(%arg0: i32, %arg1: i32) -> (i32, i32) {
    %c0_i32 = arith.constant 0 : i32
    %c0_i32_0 = arith.constant 0 : i32
    return %c0_i32, %arg1 : i32, i32
  }
  func.func @transform_7(%arg0: i32, %arg1: i32) -> (i32, i32) {
    %c0_i32 = arith.constant 0 : i32
    %c0_i32_0 = arith.constant 0 : i32
    return %c0_i32, %arg1 : i32, i32
  }
  func.func @transform_8(%arg0: i32, %arg1: i32) -> (i32, i32) {
    %c0_i32 = arith.constant 0 : i32
    return %arg0, %arg1 : i32, i32
  }
}

</mosaic_0001>

<bundles_post_ra>
// kernel: tpu_custom_call.1
= control target key start
LH: loop header
LB: loop body
LE: loop exit
PB: predicated region body
PF: predicated region fallthrough
CT: control target
= control target key end

     0   :  { %s2226_s0 = inlined_call_operand.hbm [shape: f32[16,32], index: 0, kind: input, shape index: {}]   ;;  %s2227_s1 = inlined_call_operand.hbm [shape: f32[32,32], index: 1, kind: input, shape index: {}]   ;;  %s2228_s2 = inlined_call_operand.hbm [shape: f32[1,32], index: 2, kind: input, shape index: {}]   ;;  %s2229_s3 = inlined_call_operand.hbm [shape: f32[1,32], index: 3, kind: input, shape index: {}]   ;;  %s2230_s4 = inlined_call_operand.hbm [shape: f32[1,32], index: 4, kind: input, shape index: {}]   ;;  %s2231_s5 = inlined_call_operand.hbm [shape: f32[32,16], index: 5, kind: input, shape index: {}]   ;;  %s2232_s6 = inlined_call_operand.hbm [shape: f32[16,256], index: 6, kind: input, shape index: {}]   ;;  %s2233_s7 = inlined_call_operand.hbm [shape: f32[1,256], index: 7, kind: input, shape index: {}]   ;;  %s2234_s8 = inlined_call_operand.hbm [shape: f32[16,256], index: 8, kind: output, shape index: {}]  }
   0x1   :  { %2265 = sst [smem:[#allocation41_spill]] %s2226_s0 }
   0x2   :  { %2266 = sst [smem:[#allocation42_spill]] %s2227_s1 }
   0x3   :  { %2267 = sst [smem:[#allocation43_spill]] %s2234_s8 }
   0x4   :  { %13 = vsyncpa [#allocation4], 0 }
   0x5   :  { %15 = vsyncpa [#allocation4 + $0x1], 0 }
   0x6   :  { %16 = vsyncpa [#allocation7], 0 }
   0x7   :  { %17 = vsyncpa [#allocation10], 0 }
   0x8   :  { %18 = vsyncpa [#allocation13], 0 }
   0x9   :  { %19 = vsyncpa [#allocation5], 0 }
   0xa   :  { %21 = vsyncpa [#allocation5 + $0x1], 0  ;;  %s1692_s27 = smov 0   ;;  %s1694_s28 = smov 0  }
   0xb   :  { %s1696_s29 = smov 0   ;;  %s1698_s30 = smov 0  }
   0xc   :  { %s1700_s9 = smov 0   ;;  %s1702_s10 = smov 0  }
   0xd   :  { %s1704_s11 = smov 0   ;;  %s1706_s12 = smov 0  }
   0xe   :  { %s1708_s13 = smov 0   ;;  %s1710_s14 = smov 0  }
   0xf   :  { %s1712_s15 = smov 0   ;;  %s1714_s16 = smov 0  }
  0x10   :  { %s1716_s17 = smov 0   ;;  %s1718_s18 = smov 0  }
  0x11 LB: > { %2268 = sst [smem:[#allocation23_spill]] %s1575_s27  ;;  %s1761_s19 = sadd.s32 4294967295, %s1627_s18   ;;  %s1627_s18 = sphi %s1718_s18, %s27_s18   ;;  %s1623_s17 = sphi %s1716_s17, %s2349_s17   ;;  %s1619_s16 = sphi %s1714_s16, %s2348_s16   ;;  %s1615_s15 = sphi %s1712_s15, %s2338_s15   ;;  %s1611_s14 = sphi %s1710_s14, %s2347_s14   ;;  %s1607_s13 = sphi %s1708_s13, %s2337_s13   ;;  %s1603_s12 = sphi %s1706_s12, %s2346_s12   ;;  %s1599_s11 = sphi %s1704_s11, %s2345_s11   ;;  %s1595_s10 = sphi %s1702_s10, %s2344_s10   ;;  %s1591_s9 = sphi %s1700_s9, %s2343_s9   ;;  %s1587_s30 = sphi %s1698_s30, %s2342_s30   ;;  %s1583_s29 = sphi %s1696_s29, %s2333_s29   ;;  %s1579_s28 = sphi %s1694_s28, %s2332_s28   ;;  %s1575_s27 = sphi %s1692_s27, %s2331_s27  }
  0x12   : > { %2269 = sst [smem:[#allocation24_spill]] %s1579_s28  ;;  %s36_s21 = sadd.s32 1, %s1619_s16 }
  0x13   : > { %2270 = sst [smem:[#allocation25_spill]] %s1583_s29  ;;  %s39_s22 = sadd.s32 1, %s1623_s17 }
  0x14   : > { %2271 = sst [smem:[#allocation26_spill]] %s1591_s9  ;;  %p37_p0 = scmp.ge.s32.totalorder %s36_s21, 2 }
  0x15   : > { %2272 = sst [smem:[#allocation27_spill]] %s1607_s13  ;;  %s46_s23 = sadd.s32 1, %s1607_s13 }
  0x16   : > { %2273 = sst [smem:[#allocation28_spill]] %s1611_s14  ;;  %p53_p1 = scmp.ne.s32.totalorder %s1607_s13, %s1603_s12 }
  0x17   : > { %2274 = sst [smem:[#allocation29_spill]] %s1615_s15  ;;  %p54_p2 = scmp.eq.s32.totalorder %s1627_s18, 0 }
  0x18   : > { %2275 = sst [smem:[#allocation30_spill]] %s1623_s17  ;;  %s2351_s21 = smov (%p37_p0, %s36_s21), 0 }
  0x19   : > { %2276 = sst [smem:[#allocation31_spill]] %s1627_s18  ;;  %s2353_s22 = smov (!%p37_p0, %s39_s22), %s1623_s17 }
  0x1a   : > { %2277 = sst [smem:[#allocation32_spill]] %s2351_s21  ;;  %p1775_p3 = por %p54_p2, %p53_p1 }
  0x1b   : > { %p59_p4 = scmp.ne.s32.totalorder %s1603_s12, %s1599_s11  ;;  %p41_p5 = scmp.ge.s32.totalorder %s2353_s22, 2 }
  0x1c   : > { %p2244_p6 = scmp.eq.s32.totalorder %s1761_s19, 0  ;;  %s174_s25 = ssub.s32 %s1619_s16, %s2351_s21 }
  0x1d   : > { %s177_s26 = sadd.s32 1, %s1595_s10  ;;  %s2355_s22 = smov (%p41_p5, %s2353_s22), 0 }
  0x1e   : > { %2279 = sst [smem:[#allocation33_spill]] %s2355_s22  ;;  %p1788_p7 = por %p2244_p6, %p59_p4 }
  0x1f   : > { %p175_p8 = scmp.eq.s32.totalorder %s174_s25, 0  ;;  %s43_s11 = ssub.s32 %s1623_s17, %s2355_s22 }
  0x20   : > { %s2280_s20 = scalar_select %p1788_p7, 1, 0 }
  0x21   : > { %p184_p9 = scmp.ne.s32.totalorder %s1595_s10, %s1591_s9  ;;  %p44_p10 = scmp.eq.s32.totalorder %s43_s11, 0 }
  0x22   : > { %2281 = sst [smem:[#allocation34_spill]] %s2280_s20  ;;  %p190_p11 = scmp.ne.s32.totalorder %s1591_s9, %s1587_s30 }
  0x23   : > { %s1799_s21 = scalar_select %p175_p8, %s1595_s10, %s177_s26  }
  0x24   : > { %s1802_s8 = scalar_select %p44_p10, %s1607_s13, %s46_s23  }
  0x25   : > { %2282 = sst [smem:[#allocation35_spill]] %s1799_s21  ;;  %p1806_p12 = por %p184_p9, %p54_p2 }
  0x26   : > { %2283 = sst [smem:[#allocation36_spill]] %s1802_s8  ;;  %p1812_p13 = por %p190_p11, %p2244_p6 }
  0x27   : > { %s228_s14 = sor.u32 %s174_s25, %s43_s11  ;;  %s231_s20 = sadd.s32 1, %s1583_s29 }
  0x28   : > { %s2285_s22 = scalar_select %p1812_p13, 1, 0 }
  0x29   : > { %p229_p0 = scmp.eq.s32.totalorder %s228_s14, 0  ;;  %p241_p1 = scmp.ne.s32.totalorder %s1583_s29, %s1579_s28 }
  0x2a   : > { %2286 = sst [smem:[#allocation37_spill]] %s2285_s22  ;;  %p242_p4 = scmp.eq.s32.totalorder %s1761_s19, 3 }
  0x2b   : > { %p247_p5 = scmp.ne.s32.totalorder %s1579_s28, %s1575_s27  ;;  %s2290_s26 = sadd.s32 4294967294, %s1627_s18  }
  0x2c   : > { %s1823_s30 = scalar_select %p229_p0, %s1583_s29, %s231_s20  }
  0x2d   : > { %p1825_p2 = por %p242_p4, %p241_p1  ;;  %p248_p8 = scmp.eq.s32.totalorder %s2290_s26, 3 }
  0x2e   : > { %2287 = sst [smem:[#allocation38_spill]] %s1823_s30  ;;  %p1098_p10 = scmp.lt.s32.totalorder %s1627_s18, 4 }
  0x2f   : > { %s2288_s23 = scalar_select %p1825_p2, 1, 0 }
  0x30   : > { %p1831_p9 = por %p248_p8, %p247_p5  ;;  %s327_s25 = sand.u32 1, %s1627_s18  }
  0x31   : > { %2289 = sst [smem:[#allocation39_spill]] %s2288_s23  ;;  %s329_s14 = sand.u32 1, %s1607_s13  }
  0x32   : > { %s2291_s8 = scalar_select %p1831_p9, 1, 0 }
  0x33   : > { %s951_s11 = sshll.u32 %s329_s14, 3  ;;  %s952_s21 = sshll.u32 %s1623_s17, 7 }
  0x34   : > { %2292 = sst [smem:[#allocation40_spill]] %s2291_s8  ;;  %s2293_s0 = sld [smem:[#allocation41_spill]] }
  0x35   : > { %s331_s30 = scalar_lea.vmem [#allocation3], %s951_s11  ;;  %p1848_p11 = pnand %p1098_p10, %p1775_p3 }
  0x36   : > { %s338_s26 = sshll.u32 %s331_s30, 4  ;;  %p1854_p0 = pnand %p1098_p10, %p1806_p12  ;;  %s1844_s26 = int_to_ptr.vmem [resolvable:$true] %s338_s26 }
  0x37   : > { %p1237_p4 = pneg %p1848_p11 }
  0x38   : > { %s2295_s9 = scalar_select %p1854_p0, 1, 0 }
  0x3a   : > { %s1842_s20 = scalar_lea.hbm %s2293_s0, %s952_s21  ;;  %s1858_s21 = scalar_lea.sflag [#allocation4], %s327_s25 }
  0x3b   : > { %s1235_s22 = scalar_lea.hbm %s1842_s20, 128  ;;  %s1240_s15 = scalar_lea.hbm %s2293_s0, 256 }
  0x3c   : > { %p1236_p1 = scmp.ne.s32.totalorder %s1842_s20, %s1235_s22  ;;  %p1241_p12 = scmp.lt.u32.totalorder %s1842_s20, %s2293_s0 }
  0x3d   : > { %p1242_p8 = scmp.lt.u32.totalorder %s1240_s15, %s1235_s22  ;;  %p1244_p6 = scmp.lt.u32.totalorder %s1235_s22, %s1842_s20 }
  0x3e   : > { %p1238_p5 = pnand %p1237_p4, %p1236_p1 }
  0x3f   : > { %p1243_p10 = por %p1242_p8, %p1241_p12 }
  0x40   : > { %p1239_p3 = pneg %p1238_p5 }
  0x41   : > { %p1245_p9 = por %p1244_p6, %p1243_p10 }
  0x43   : > { %p1246_p2 = pnand %p1245_p9, %p1239_p3 }
  0x45   : > { %1249 = shalt.err (!%p1246_p2)
}
  0x46   : > { %s1250_s25 = scalar_lea.vmem %s1844_s26, 128  ;;  %s1629_s24 = smov [#allocation3]  }
  0x47   : > { %p1251_p1 = scmp.ne.s32.totalorder %s1844_s26, %s1250_s25  ;;  %s1255_s30 = sshll.u32 %s1629_s24, 4  ;;  %s1256_s30 = int_to_ptr.vmem [resolvable:$false] %s1255_s30 }
  0x48   : > { %s1257_s14 = scalar_lea.vmem %s1256_s30, 256  ;;  %p1258_p7 = scmp.lt.s32.totalorder %s1844_s26, %s1256_s30 }
  0x49   : > { %p1253_p5 = pnand %p1251_p1, %p1237_p4  ;;  %p1259_p12 = scmp.lt.s32.totalorder %s1257_s14, %s1250_s25 }
  0x4b   : > { %p1254_p13 = pneg %p1253_p5  ;;  %p1260_p8 = por %p1259_p12, %p1258_p7 }
  0x4d   : > { %p1261_p6 = pnand %p1260_p8, %p1254_p13 }
  0x4f   : > { %1264 = shalt.err (!%p1261_p6)
}
  0x50   : > { %1082 = dma.hbm_to_vmem [thread:$0]  (!%p1848_p11), %s1842_s20, 128, %s1844_s26, %s1858_s21  }
  0x51   : > { %p944_p2 = scmp.ge.s32.totalorder %s1627_s18, 1  ;;  %p255_p9 = scmp.lt.s32.totalorder %s1627_s18, 5 }
  0x52   : > { %s1630_s22 = smov [#allocation6]   ;;  %s1631_s29 = smov [#allocation9]  }
  0x53   : > { %s267_s15 = sshll.u32 %s1630_s22, 4  ;;  %p1888_p4 = pnand %p944_p2, %p255_p9  ;;  %s1892_s15 = int_to_ptr.vmem [resolvable:$true] %s267_s15 }
  0x54   : > { %s292_s25 = sshll.u32 %s1631_s29, 4  ;;  %s2254_s24 = sand.u32 1, %s1595_s10   ;;  %s1896_s25 = int_to_ptr.vmem [resolvable:$true] %s292_s25 }
  0x55   : > { %s2296_s11 = scalar_select %p1888_p4, 1, 0 }
  0x56   : > { %p1063_p7 = pneg %p1888_p4  ;;  %p2297_p13 = scmp.eq.s32.totalorder %s1761_s19, 0 }
  0x57   : > { %s1907_s26 = sshll.u32 %s2254_s24, 4  ;;  %s954_s30 = sshll.u32 %s1619_s16, 7 }
  0x58   : > { %p1901_p11 = pnand %p1063_p7, %p2297_p13  ;;  %s1913_s0 = scalar_lea.hbm %s2232_s6, %s954_s30 }
  0x59   : > { %s2299_s1 = sld [smem:[#allocation42_spill]] }
  0x5a   : > { %s2298_s20 = scalar_select %p1901_p11, 1, 0 }
  0x5b   : > { %p1923_p10 = pneg %p1901_p11 }
  0x5f   : > { %s1265_s13 = scalar_lea.hbm %s2299_s1, 512 }
  0x60   : > { %p1266_p3 = scmp.ne.s32.totalorder %s2299_s1, %s1265_s13  ;;  %p1272_p12 = scmp.lt.u32.totalorder %s1265_s13, %s2299_s1 }
  0x62   : > { %p1268_p1 = pnand %p1923_p10, %p1266_p3 }
  0x64   : > { %p1269_p5 = pneg %p1268_p1 }
  0x66   : > { %p1274_p8 = pnand %p1272_p12, %p1269_p5 }
  0x68   : > { %1277 = shalt.err (!%p1274_p8)
}
  0x69   : > { %s1278_s8 = scalar_lea.vmem %s1892_s15, 512  ;;  %p1286_p7 = scmp.lt.s32.totalorder %s1892_s15, %s1892_s15 }
  0x6a   : > { %p1279_p6 = scmp.ne.s32.totalorder %s1892_s15, %s1278_s8  ;;  %p1287_p13 = scmp.lt.s32.totalorder %s1278_s8, %s1278_s8 }
  0x6c   : > { %p1281_p2 = pnand %p1279_p6, %p1923_p10  ;;  %p1288_p3 = por %p1287_p13, %p1286_p7 }
  0x6e   : > { %p1282_p9 = pneg %p1281_p2 }
  0x70   : > { %p1289_p1 = pnand %p1288_p3, %p1282_p9 }
  0x72   : > { %1292 = shalt.err (!%p1289_p1)
}
  0x73   : > { %s1632_s27 = smov 128   ;;  %s1633_s13 = smov 8  }
  0x74   : > { %1066 = dma.hbm_to_vmem [thread:$0]  (!%p1901_p11), %s2299_s1, 512, %s1892_s15, [#allocation7], %s1632_s27, %s1632_s27, %s1633_s13  }
  0x75   : > { %s1293_s30 = scalar_lea.hbm %s2229_s3, 16 }
  0x76   : > { %p1294_p5 = scmp.ne.s32.totalorder %s2229_s3, %s1293_s30  ;;  %p1300_p6 = scmp.lt.u32.totalorder %s1293_s30, %s2229_s3 }
  0x78   : > { %p1296_p12 = pnand %p1294_p5, %p1923_p10 }
  0x7a   : > { %p1297_p8 = pneg %p1296_p12 }
  0x7c   : > { %p1302_p2 = pnand %p1300_p6, %p1297_p8 }
  0x7e   : > { %1305 = shalt.err (!%p1302_p2)
}
  0x7f   : > { %s1306_s15 = scalar_lea.vmem %s1896_s25, 16  ;;  %s1313_s24 = scalar_lea.vmem %s1896_s25, 32 }
  0x80   : > { %p1307_p9 = scmp.ne.s32.totalorder %s1896_s25, %s1306_s15  ;;  %p1314_p3 = scmp.lt.s32.totalorder %s1896_s25, %s1896_s25 }
  0x81   : > { %p1315_p1 = scmp.lt.s32.totalorder %s1313_s24, %s1306_s15 }
  0x82   : > { %p1309_p7 = pnand %p1307_p9, %p1923_p10 }
  0x83   : > { %p1316_p5 = por %p1315_p1, %p1314_p3 }
  0x84   : > { %p1310_p13 = pneg %p1309_p7 }
  0x86   : > { %p1317_p12 = pnand %p1316_p5, %p1310_p13 }
  0x88   : > { %1320 = shalt.err (!%p1317_p12)
}
  0x89   : > { %1072 = dma.hbm_to_vmem [thread:$0]  (!%p1901_p11), %s2229_s3, 16, %s1896_s25, [#allocation10]  }
  0x8a   : > { %s349_s17 = scalar_lea.vmem [#allocation14], %s1907_s26  ;;  %s1321_s29 = scalar_lea.hbm %s1913_s0, 256 }
  0x8b   : > { %s355_s22 = sshll.u32 %s349_s17, 4  ;;  %p1322_p8 = scmp.ne.s32.totalorder %s1913_s0, %s1321_s29  ;;  %s1972_s22 = int_to_ptr.vmem [resolvable:$true] %s355_s22 }
  0x8c   : > { %p2262_p6 = pneg %p1854_p0  ;;  %s1326_s8 = scalar_lea.hbm %s2232_s6, 512 }
  0x8d   : > { %p1327_p7 = scmp.lt.u32.totalorder %s1913_s0, %s2232_s6  ;;  %p1328_p13 = scmp.lt.u32.totalorder %s1326_s8, %s1321_s29 }
  0x8e   : > { %p1324_p2 = pnand %p2262_p6, %p1322_p8  ;;  %p1330_p1 = scmp.lt.u32.totalorder %s1321_s29, %s1913_s0 }
  0x8f   : > { %p1329_p3 = por %p1328_p13, %p1327_p7 }
  0x90   : > { %p1325_p9 = pneg %p1324_p2 }
  0x91   : > { %p1331_p5 = por %p1330_p1, %p1329_p3 }
  0x93   : > { %p1332_p12 = pnand %p1331_p5, %p1325_p9 }
  0x95   : > { %1335 = shalt.err (!%p1332_p12)
}
  0x96   : > { %s1336_s25 = scalar_lea.vmem %s1972_s22, 256  ;;  %s1634_s26 = smov [#allocation14]  }
  0x97   : > { %p1337_p8 = scmp.ne.s32.totalorder %s1972_s22, %s1336_s25  ;;  %s1341_s28 = sshll.u32 %s1634_s26, 4  ;;  %s1342_s28 = int_to_ptr.vmem [resolvable:$false] %s1341_s28 }
  0x98   : > { %s1343_s23 = scalar_lea.vmem %s1342_s28, 512  ;;  %p1344_p11 = scmp.lt.s32.totalorder %s1972_s22, %s1342_s28 }
  0x99   : > { %p1339_p2 = pnand %p1337_p8, %p2262_p6  ;;  %p1345_p7 = scmp.lt.s32.totalorder %s1343_s23, %s1336_s25 }
  0x9b   : > { %p1340_p4 = pneg %p1339_p2  ;;  %p1346_p13 = por %p1345_p7, %p1344_p11 }
  0x9d   : > { %p1347_p3 = pnand %p1346_p13, %p1340_p4 }
  0x9f   : > { %1350 = shalt.err (!%p1347_p3)
}
  0xa0   : > { %s1635_s17 = smov 256   ;;  %s1636_s29 = smov [#allocation8]  }
  0xa1   : > { %1085 = dma.hbm_to_vmem [thread:$0]  (!%p1854_p0), %s1913_s0, 256, %s1972_s22, %s1858_s21, %s1635_s17, %s1632_s27, %s1633_s13  }
  0xa2   : > { %s281_s14 = sshll.u32 %s1636_s29, 4  ;;  %s1637_s30 = smov [#allocation11]   ;;  %s282_s14 = int_to_ptr.vmem [resolvable:$true] %s281_s14 }
  0xa3   : > { %s303_s8 = sshll.u32 %s1637_s30, 4  ;;  %s1351_s25 = scalar_lea.hbm %s2228_s2, 16  ;;  %s304_s8 = int_to_ptr.vmem [resolvable:$true] %s303_s8 }
  0xa4   : > { %p1352_p4 = scmp.ne.s32.totalorder %s2228_s2, %s1351_s25  ;;  %p1358_p1 = scmp.lt.u32.totalorder %s1351_s25, %s2228_s2 }
  0xa6   : > { %p1354_p11 = pnand %p1352_p4, %p1923_p10 }
  0xa8   : > { %p1355_p9 = pneg %p1354_p11 }
  0xaa   : > { %p1360_p5 = pnand %p1358_p1, %p1355_p9 }
  0xac   : > { %1363 = shalt.err (!%p1360_p5)
}
  0xad   : > { %s1364_s0 = scalar_lea.vmem %s282_s14, 16  ;;  %s1371_s22 = scalar_lea.vmem %s282_s14, 32 }
  0xae   : > { %p1365_p12 = scmp.ne.s32.totalorder %s282_s14, %s1364_s0  ;;  %p1372_p7 = scmp.lt.s32.totalorder %s282_s14, %s282_s14 }
  0xaf   : > { %p1373_p13 = scmp.lt.s32.totalorder %s1371_s22, %s1364_s0 }
  0xb0   : > { %p1367_p8 = pnand %p1365_p12, %p1923_p10 }
  0xb1   : > { %p1374_p3 = por %p1373_p13, %p1372_p7 }
  0xb2   : > { %p1368_p2 = pneg %p1367_p8 }
  0xb4   : > { %p1375_p6 = pnand %p1374_p3, %p1368_p2 }
  0xb6   : > { %1378 = shalt.err (!%p1375_p6)
}
  0xb7   : > { %p2301_p4 = scmp.ne.s32.totalorder %s2298_s20, 0  ;;  %s1379_s15 = scalar_lea.hbm %s2230_s4, 16 }
  0xb8   : > { %p1380_p11 = scmp.ne.s32.totalorder %s2230_s4, %s1379_s15  ;;  %p1386_p6 = scmp.lt.u32.totalorder %s1379_s15, %s2230_s4 }
  0xb9   : > { %1069 = dma.hbm_to_vmem [thread:$0]  (!%p2301_p4), %s2228_s2, 16, %s282_s14, [#allocation7]  }
  0xba   : > { %p1382_p9 = pnand %p1380_p11, %p1923_p10 }
  0xbc   : > { %p1383_p1 = pneg %p1382_p9 }
  0xbe   : > { %p1388_p5 = pnand %p1386_p6, %p1383_p1 }
  0xc0   : > { %1391 = shalt.err (!%p1388_p5)
}
  0xc1   : > { %s1392_s23 = scalar_lea.vmem %s304_s8, 16  ;;  %s1399_s14 = scalar_lea.vmem %s304_s8, 32 }
  0xc2   : > { %p1393_p12 = scmp.ne.s32.totalorder %s304_s8, %s1392_s23  ;;  %p1400_p7 = scmp.lt.s32.totalorder %s304_s8, %s304_s8 }
  0xc3   : > { %p1401_p13 = scmp.lt.s32.totalorder %s1399_s14, %s1392_s23 }
  0xc4   : > { %p1395_p8 = pnand %p1393_p12, %p1923_p10 }
  0xc5   : > { %p1402_p3 = por %p1401_p13, %p1400_p7 }
  0xc6   : > { %p1396_p2 = pneg %p1395_p8 }
  0xc8   : > { %p1403_p0 = pnand %p1402_p3, %p1396_p2 }
  0xca   : > { %1406 = shalt.err (!%p1403_p0)
}
  0xcb   : > { %1075 = dma.hbm_to_vmem [thread:$0]  (!%p2301_p4), %s2230_s4, 16, %s304_s8, [#allocation10]  }
  0xcc   : > { %s1638_s17 = smov [#allocation12]   ;;  %s955_s1 = sshll.u32 %s1619_s16, 4 }
  0xcd   : > { %s313_s29 = sshll.u32 %s1638_s17, 4  ;;  %s1407_s24 = scalar_lea.hbm %s2231_s5, 512  ;;  %s314_s29 = int_to_ptr.vmem [resolvable:$true] %s313_s29 }
  0xce   : > { %p1408_p0 = scmp.ne.s32.totalorder %s2231_s5, %s1407_s24  ;;  %p1414_p1 = scmp.lt.u32.totalorder %s1407_s24, %s2231_s5 }
  0xd0   : > { %p1410_p11 = pnand %p1408_p0, %p1923_p10 }
  0xd2   : > { %p1411_p9 = pneg %p1410_p11 }
  0xd4   : > { %p1416_p6 = pnand %p1414_p1, %p1411_p9 }
  0xd6   : > { %1419 = shalt.err (!%p1416_p6)
}
  0xd7   : > { %s1420_s8 = scalar_lea.vmem %s314_s29, 512  ;;  %p1428_p2 = scmp.lt.s32.totalorder %s314_s29, %s314_s29 }
  0xd8   : > { %p1421_p5 = scmp.ne.s32.totalorder %s314_s29, %s1420_s8  ;;  %p1429_p7 = scmp.lt.s32.totalorder %s1420_s8, %s1420_s8 }
  0xda   : > { %p1423_p12 = pnand %p1421_p5, %p1923_p10  ;;  %p1430_p13 = por %p1429_p7, %p1428_p2 }
  0xdc   : > { %p1424_p8 = pneg %p1423_p12 }
  0xde   : > { %p1431_p3 = pnand %p1430_p13, %p1424_p8 }
  0xe0   : > { %1434 = shalt.err (!%p1431_p3)
}
  0xe1   : > { %1078 = dma.hbm_to_vmem [thread:$0]  (!%p2301_p4), %s2231_s5, 512, %s314_s29, [#allocation13], %s1632_s27, %s1632_s27, %s1633_s13  }
  0xe2   : > { %s2063_s17 = scalar_lea.hbm %s2233_s7, %s955_s1  ;;  %s2302_s30 = sand.u32 1, %s1595_s10  }
  0xe3   : > { %s368_s20 = scalar_lea.vmem [#allocation15], %s2302_s30  ;;  %s1435_s24 = scalar_lea.hbm %s2063_s17, 16 }
  0xe4   : > { %s375_s15 = sshll.u32 %s368_s20, 4  ;;  %p1436_p10 = scmp.ne.s32.totalorder %s2063_s17, %s1435_s24  ;;  %s376_s15 = int_to_ptr.vmem [resolvable:$true] %s375_s15 }
  0xe5   : > { %p2303_p0 = scmp.ne.s32.totalorder %s2295_s9, 0  ;;  %s1440_s29 = scalar_lea.hbm %s2233_s7, 32 }
  0xe6   : > { %p1441_p4 = scmp.lt.u32.totalorder %s2063_s17, %s2233_s7  ;;  %p1442_p6 = scmp.lt.u32.totalorder %s1440_s29, %s1435_s24 }
  0xe7   : > { %p2304_p11 = pneg %p2303_p0  ;;  %p1444_p12 = scmp.lt.u32.totalorder %s1435_s24, %s2063_s17 }
  0xe8   : > { %p1443_p5 = por %p1442_p6, %p1441_p4 }
  0xe9   : > { %p1438_p9 = pnand %p1436_p10, %p2304_p11 }
  0xea   : > { %p1445_p8 = por %p1444_p12, %p1443_p5 }
  0xeb   : > { %p1439_p1 = pneg %p1438_p9 }
  0xed   : > { %p1446_p2 = pnand %p1445_p8, %p1439_p1 }
  0xef   : > { %1449 = shalt.err (!%p1446_p2)
}
  0xf0   : > { %s1450_s26 = scalar_lea.vmem %s376_s15, 16  ;;  %p2305_p13 = pmov %p2304_p11 }
  0xf1   : > { %p1451_p7 = scmp.ne.s32.totalorder %s376_s15, %s1450_s26  ;;  %s1639_s28 = smov [#allocation15]  }
  0xf2   : > { %s1455_s23 = sshll.u32 %s1639_s28, 4  ;;  %s1456_s23 = int_to_ptr.vmem [resolvable:$false] %s1455_s23 }
  0xf3   : > { %p1453_p3 = pnand %p1451_p7, %p2305_p13  ;;  %s1457_s8 = scalar_lea.vmem %s1456_s23, 32 }
  0xf4   : > { %p1458_p11 = scmp.lt.s32.totalorder %s376_s15, %s1456_s23  ;;  %p1459_p9 = scmp.lt.s32.totalorder %s1457_s8, %s1450_s26 }
  0xf5   : > { %p1454_p10 = pneg %p1453_p3 }
  0xf6   : > { %p1460_p4 = por %p1459_p9, %p1458_p11 }
  0xf8   : > { %p1461_p6 = pnand %p1460_p4, %p1454_p10 }
  0xfa   : > { %1464 = shalt.err (!%p1461_p6)
}
  0xfb   : > { %1088 = dma.hbm_to_vmem [thread:$0]  (!%p2303_p0), %s2063_s17, 16, %s376_s15, %s1858_s21  }
  0xfc   : > { %p2306_p1 = scmp.ne.s32.totalorder %s2296_s11, 0 }
  0xfd   : > { %s2307_s14 = sld [smem:[#allocation34_spill]] (!%p2306_p1)  ;;  %s386_s0 = sand.u32 (!%p2306_p1), 1, %s1761_s19  }
  0xfe   : > { %384 = sbr.rel (%p2306_p1) target bundleno = 1291 (0x50b), region = 52  ;;  %s388_s22 = sand.u32 (!%p2306_p1), 1, %s1603_s12  }
  0xff   : > { %s2091_s18 = sshll.u32 (!%p2306_p1), %s388_s22, 3  ;;  %s387_s30 = scalar_lea.sflag (!%p2306_p1), [#allocation4], %s386_s0 }
 0x100   : > { %s390_s20 = scalar_lea.vmem (!%p2306_p1), [#allocation3], %s2091_s18 }
 0x103   : > { %p2308_p5 = scmp.ne.s32.totalorder (!%p2306_p1), %s2307_s14, 0 }
 0x105   : > { %1550 = dma.done.wait (%p2308_p5), %s387_s30, 128  }
 0x106   : > { %1552 = vsyncadd (%p2308_p5), %s387_s30, 4294967168  ;;  %p2309_p0 = scmp.eq.s32.totalorder %s1761_s19, 0 }
 0x108   : > { %1554 = dma.done.wait (%p2309_p0), [#allocation7], 528   ;;  %p2310_p12 = pmov %p2309_p0 }
 0x109   : > { %p2311_p8 = pmov %p2309_p0 }
 0x10a   : > { %1556 = vsyncadd (%p2310_p12), [#allocation7], 4294966768 }
 0x10b   : > { %1558 = dma.done.wait (%p2311_p8), [#allocation10], 32   ;;  %p2312_p2 = pmov %p2309_p0 }
 0x10c   : > { %p2313_p7 = pmov %p2309_p0 }
 0x10d   : > { %1560 = vsyncadd (%p2312_p2), [#allocation10], 4294967264 }
 0x10e   : > { %1562 = dma.done.wait (%p2313_p7), [#allocation13], 512   ;;  %p2314_p13 = pmov %p2309_p0 }
 0x10f   : > { %s2315_s9 = sld [smem:[#allocation26_spill]]  ;;  %s2316_s21 = sld [smem:[#allocation37_spill]] }
 0x110   : > { %1564 = vsyncadd (%p2314_p13), [#allocation13], 4294966784 }
 0x115   : > { %s417_s11 = sand.u32 1, %s2315_s9   ;;  %p2317_p3 = scmp.ne.s32.totalorder %s2316_s21, 0 }
 0x116   : > { %s2111_s17 = sshll.u32 %s417_s11, 4 }
 0x117   : > { %s419_s15 = scalar_lea.vmem [#allocation14], %s2111_s17 }
 0x118   : > { %1566 = dma.done.wait (%p2317_p3), %s387_s30, 272  }
 0x119   : > { %1568 = vsyncadd (%p2317_p3), %s387_s30, 4294967024  ;;  %s2318_s24 = sld [smem:[#allocation24_spill]]  ;;  %s2123_s19 = scalar_lea.vmem [#allocation15], %s417_s11 }
 0x11a   : > { %s2319_s1 = sld [smem:[#allocation28_spill]] }
 0x11f   : > { %s466_s27 = sand.u32 1, %s2318_s24  }
 0x120   : > { %s2121_s13 = sshll.u32 %s466_s27, 3  ;;  %p965_p10 = scmp.ne.s32.totalorder %s2319_s1, 0 }
 0x121   : > { %s468_s29 = scalar_lea.vmem [#allocation16], %s2121_s13  ;;  %v474_v0 = vld [vmem:[#allocation6] sm:$0xff] (!%p965_p10)  ;;  %v475_v1 = vld [vmem:[#allocation6 + $0x8] sm:$0xff] (!%p965_p10)  ;;  %v476_v2 = vld [vmem:[#allocation6 + $0x10] sm:$0xff] (!%p965_p10)  ;;  %v1640_v3 = vmov (!%p965_p10), 0.0|0.0   ;;  %vm1641_vm0 = vmmov (!%p965_p10), 0  }
 0x122   : > { %472 = sbr.rel (%p965_p10) target bundleno = 1056 (0x420), region = 88  ;;  %1020 = vmatprep.subr.bf16.mxu0 (!%p965_p10), %v1640_v3  ;;  %v1021_v4 = vpack.c.bf16 (!%p965_p10), %v475_v1, %v474_v0  ;;  %v477_v5 = vld [vmem:[#allocation6 + $0x18] sm:$0xff] (!%p965_p10)  ;;  %v1642_v6 = vmov (!%p965_p10), 0.0   ;;  %1026 = vmatprep.subr.bf16.mxu1 (!%p965_p10), %v1640_v3  ;;  %vm485_vm1 = vcmask (!%p965_p10), 261120   ;;  %v966_v9 = vld [vmem:[#allocation8] ss:$0 sm:$0xff] (!%p965_p10) }
 0x123   : > { %999 = vmatprep.mubr.msk.f32.mxu0 (!%p965_p10), %vm1641_vm0, %v1642_v6  ;;  %1010 = vmatprep.mubr.msk.f32.mxu1 (!%p965_p10), %vm1641_vm0, %v1642_v6  ;;  %v1024_v7 = vpack.c.bf16 (!%p965_p10), %v477_v5, %v476_v2  ;;  %v473_v8 = vld [vmem:[%s390_s20] sm:$0xff] (!%p965_p10)  ;;  %v594_v24 = vld [vmem:[#allocation12] sm:$0xff] (!%p965_p10)  ;;  %v968_v34 = vld [vmem:[#allocation9] ss:$0 sm:$0xff] (!%p965_p10)  ;;  %vm671_vm2 = vcmask (!%p965_p10), 130048  }
 0x124   : > { %1022 = vmatpush3.bf16.msra.mxu0 (!%p965_p10), %v1021_v4  ;;  %v595_v25 = vld [vmem:[#allocation12 + $0x8] sm:$0xff] (!%p965_p10)  ;;  %v596_v26 = vld [vmem:[#allocation12 + $0x10] sm:$0xff] (!%p965_p10)  ;;  %v597_v28 = vld [vmem:[#allocation12 + $0x18] sm:$0xff] (!%p965_p10) }
 0x125   : > { %1023 = vmatprep.subr.bf16.mxu0 (!%p965_p10), %v1640_v3  ;;  %v1027_v27 = vpack.c.bf16 (!%p965_p10), %v595_v25, %v594_v24  ;;  %v1030_v29 = vpack.c.bf16 (!%p965_p10), %v597_v28, %v596_v26  ;;  %v969_v36 = vld [vmem:[#allocation11] ss:$0 sm:$0xff] (!%p965_p10) }
 0x127   : > { %1028 = vmatpush3.bf16.msra.mxu1 (!%p965_p10), %v1027_v27 }
 0x128   : > { %1025 = vmatpush3.bf16.msra.mxu0 (!%p965_p10), %v1024_v7  ;;  %1029 = vmatprep.subr.bf16.mxu1 (!%p965_p10), %v1640_v3 }
 0x12b   : > { %1000 = vmatmul.mubr.msk.f32.vlgmr.msra.gmra.mrb[0].mxu0 %vm485_vm1, %v473_v8  ;;  %1031 = vmatpush3.bf16.msra.mxu1 %v1030_v29 }
 0x1fe   : > { %v555_v10 = vpop.f32.mrb[0].mxu0 }
 0x1ff   : > { %v556_v11 = vadd.f32 %v966_v9, %v555_v10  ;;  %v1001_v12 = vpop.f32.mrb[1].mxu0 }
 0x201   : > { %v560_v13 = vmul.f32 0.70710677, %v556_v11  ;;  %v559_v15 = vmul.f32 0.5, %v556_v11 }
 0x203   : > { %1231 = verf.f32 %v560_v13 }
 0x20d   : > { %v1232_v14 = vpop.eup %1231 }
 0x20e   : > { %v562_v16 = vadd.f32 1.0, %v1232_v14 }
 0x210   : > { %v563_v17 = vmul.f32 %v562_v16, %v559_v15 }
 0x212   : > { %v564_v18 = vsel %vm485_vm1, %v563_v17, 0.0 }
 0x213   : > { %565 = vadd.xlane.f32.xlu0 %v564_v18 }
 0x2a0   : > { %v566_v19 = vpop.xlane.xlu0 %565 }
 0x2a1   : > { %v568_v20 = vmul.f32 0.03125, %v566_v19 }
 0x2a3   : > { %v569_v21 = vsub.f32 %v563_v17, %v568_v20 }
 0x2a5   : > { %v570_v22 = vmul.f32 %v569_v21, %v569_v21 }
 0x2a7   : > { %v571_v23 = vsel %vm485_vm1, %v570_v22, 0.0 }
 0x2a8   : > { %572 = vadd.xlane.f32.xlu0 %v571_v23 }
 0x335   : > { %v573_v30 = vpop.xlane.xlu0 %572 }
 0x336   : > { %v574_v31 = vmul.f32 0.03125, %v573_v30 }
 0x338   : > { %v575_v32 = vadd.f32 1e-05, %v574_v31 }
 0x33a   : > { %1233 = vrsqrt.f32 %v575_v32 }
 0x344   : > { %v1234_v33 = vpop.eup %1233 }
 0x345   : > { %v577_v35 = vmul.f32 %v1234_v33, %v569_v21 }
 0x347   : > { %v585_v37 = vmul.f32 %v968_v34, %v577_v35 }
 0x349   : > { %v593_v38 = vadd.f32 %v969_v36, %v585_v37 }
 0x34b   : > { %1011 = vmatmul.mubr.msk.f32.vlgmr.msra.gmra.mrb[0].mxu1 %vm485_vm1, %v593_v38 }
 0x41e   : > { %v667_v39 = vpop.f32.mrb[0].mxu1 }
 0x41f   : > { %672 = vst.msk [vmem:[#allocation2] sm:$0xff] %vm671_vm2, %v667_v39  ;;  %v1012_v40 = vpop.f32.mrb[1].mxu1 }
 0x420 PF: > { %s2320_s25 = sld [smem:[#allocation29_spill]]  ;;  %s2321_s26 = sld [smem:[#allocation28_spill]]  ;;  %v674_v41 = vld [vmem:[%s419_s15] sm:$0xff]  ;;  %v675_v42 = vld [vmem:[%s419_s15 + $0x8] sm:$0xff]  ;;  %v1643_v43 = vmov 0.0|0.0   ;;  %vm1644_vm3 = vmmov 0  }
 0x421   : > { %1032 = vmatprep.subr.bf16.mxu0 %v1643_v43  ;;  %v1033_v44 = vpack.c.bf16 %v675_v42, %v674_v41  ;;  %v1645_v45 = vmov 0.0   ;;  %vm683_vm4 = vcmask 130048   ;;  %s2323_s23 = sld [smem:[#allocation39_spill]]  ;;  %v971_v47 = vld [vmem:[%s2123_s19] ss:$0 sm:$0xff]  ;;  %s774_s22 = sshll.u32 %s468_s29, 4  ;;  %s2147_s22 = int_to_ptr.vmem [resolvable:$true] %s774_s22 }
 0x422   : > { %1017 = vmatprep.mubr.msk.f32.mxu0 %vm1644_vm3, %v1645_v45  ;;  %s2324_s20 = sld [smem:[#allocation43_spill]]  ;;  %s759_s21 = scalar_lea.sflag [#allocation5], %s466_s27 }
 0x423   : > { %1034 = vmatpush3.bf16.msra.mxu0 %v1033_v44  ;;  %s1465_s11 = scalar_lea.vmem %s2147_s22, 128  ;;  %s1646_s17 = smov [#allocation16]  }
 0x424   : > { %p1466_p11 = scmp.ne.s32.totalorder %s2147_s22, %s1465_s11  ;;  %s1469_s15 = sshll.u32 %s1646_s17, 4  ;;  %s1470_s15 = int_to_ptr.vmem [resolvable:$false] %s1469_s15 }
 0x425   : > { %s1471_s24 = scalar_lea.vmem %s1470_s15, 256  ;;  %p1472_p1 = scmp.lt.s32.totalorder %s2147_s22, %s1470_s15 }
 0x426   : > { %v673_v46 = vld [vmem:[#allocation2] sm:$0xff]  ;;  %s974_s8 = sshll.u32 %s2320_s25, 1  ;;  %p1473_p5 = scmp.lt.s32.totalorder %s1471_s24, %s1465_s11 }
 0x427   : > { %1018 = vmatmul.mubr.msk.f32.vlgmr.msra.gmra.mrb[0].mxu0 %vm683_vm4, %v673_v46  ;;  %s770_s14 = sadd.s32 %s2321_s26, %s974_s8  ;;  %p2325_p9 = scmp.ne.s32.totalorder %s2323_s23, 0 }
 0x428   : > { %s975_s0 = sshll.u32 %s770_s14, 7  ;;  %p1474_p0 = por %p1473_p5, %p1472_p1 }
 0x429   : > { %s2145_s9 = scalar_lea.hbm %s2324_s20, %s975_s0  ;;  %p1467_p4 = pnand %p1466_p11, %p2325_p9 }
 0x42b   : > { %p1468_p6 = pneg %p1467_p4 }
 0x42d   : > { %p1475_p12 = pnand %p1474_p0, %p1468_p6 }
 0x4fa   : > { %v753_v48 = vpop.f32.mrb[0].mxu0 }
 0x4fb   : > { %v754_v49 = vadd.f32 %v971_v47, %v753_v48  ;;  %v1019_v50 = vpop.f32.mrb[1].mxu0 }
 0x4fd   : > { %757 = vst [vmem:[%s468_s29] sm:$0xff] %v754_v49 }
 0x4fe   : > { %1478 = shalt.err (!%p1475_p12)
}
 0x4ff   : > { %s1479_s27 = scalar_lea.hbm %s2145_s9, 128  ;;  %s1483_s29 = scalar_lea.hbm %s2324_s20, 512 }
 0x500   : > { %p1480_p8 = scmp.ne.s32.totalorder %s2145_s9, %s1479_s27  ;;  %p1484_p13 = scmp.lt.u32.totalorder %s2145_s9, %s2324_s20 }
 0x501   : > { %p1485_p3 = scmp.lt.u32.totalorder %s1483_s29, %s1479_s27  ;;  %p1487_p11 = scmp.lt.u32.totalorder %s1479_s27, %s2145_s9 }
 0x502   : > { %p1481_p2 = pnand %p1480_p8, %p2325_p9 }
 0x503   : > { %p1486_p10 = por %p1485_p3, %p1484_p13 }
 0x504   : > { %p1482_p7 = pneg %p1481_p2 }
 0x505   : > { %p1488_p4 = por %p1487_p11, %p1486_p10 }
 0x507   : > { %p1489_p6 = pnand %p1488_p4, %p1482_p7 }
 0x509   : > { %1492 = shalt.err (!%p1489_p6)
}
 0x50a   : > { %1061 = dma.vmem_to_hbm [thread:$0]  (%p2325_p9), %s2147_s22, 128, %s2145_s9, %s759_s21  }
 0x50b PF: > { %s2326_s26 = sld [smem:[#allocation31_spill]]  ;;  %s2327_s28 = sld [smem:[#allocation23_spill]] }
 0x50c   : > { %s2328_s8 = sld [smem:[#allocation40_spill]] }
 0x511   : > { %p1104_p1 = scmp.ge.s32.totalorder %s2326_s26, 2  ;;  %s786_s14 = sand.u32 1, %s2327_s28  }
 0x512   : > { %p2329_p5 = scmp.ne.s32.totalorder %s2328_s8, 0  ;;  %s787_s0 = scalar_lea.sflag [#allocation5], %s786_s14 }
 0x514   : > { %p1090_p0 = pnand %p1104_p1, %p2329_p5 }
 0x516   : > { %1570 = dma.done.wait (!%p1090_p0), %s787_s0, 128  }
 0x517   : > { %1572 = vsyncadd (!%p1090_p0), %s787_s0, 4294967168  ;;  %s27_s18 = sadd.s32 1, %s2326_s26   ;;  %s2331_s27 = sld [smem:[#allocation24_spill]] }
 0x518   : > { %p2179_p12 = scmp.ge.s32.totalorder %s27_s18, 6   ;;  %s2332_s28 = sld [smem:[#allocation25_spill]] }
 0x519   : > { %s2333_s29 = sld [smem:[#allocation38_spill]]  ;;  %s2334_s23 = sld [smem:[#allocation26_spill]] }
 0x51a   : > { %s2335_s22 = sld [smem:[#allocation35_spill]]  ;;  %s2336_s21 = sld [smem:[#allocation27_spill]] }
 0x51b   : > { %s2337_s13 = sld [smem:[#allocation36_spill]]  ;;  %s2338_s15 = sld [smem:[#allocation30_spill]] }
 0x51c   : > { %s2339_s17 = sld [smem:[#allocation32_spill]]  ;;  %s2340_s24 = sld [smem:[#allocation33_spill]] }
 0x51d   : > { %s2343_s9 = smov %s1595_s10  ;;  %s2345_s11 = smov %s1603_s12 }
 0x51e   : > { %s2347_s14 = smov %s1619_s16  ;;  %26 = sbr.rel (!%p2179_p12) target bundleno = 17 (0x11), region = 143 }
 0x51f   : > { %s2342_s30 = smov %s2334_s23 }
 0x520   : > { %s2344_s10 = smov %s2335_s22  ;;  %s2346_s12 = smov %s2336_s21 }
 0x522   : > { %s2348_s16 = smov %s2339_s17  ;;  %s2349_s17 = smov %s2340_s24 }
 0x525   :  { %792 = vsyncpa [#allocation4], 1 }
 0x526   :  { %794 = vsyncpa [#allocation4 + $0x1], 1 }
 0x527   :  { %795 = vsyncpa [#allocation7], 1 }
 0x528   :  { %796 = vsyncpa [#allocation10], 1 }
 0x529   :  { %797 = vsyncpa [#allocation13], 1 }
 0x52a   :  { %798 = vsyncpa [#allocation5], 1 }
 0x52b   :  { %800 = vsyncpa [#allocation5 + $0x1], 1 }

// kernel: tpu_custom_call.1
= control target key start
LH: loop header
LB: loop body
LE: loop exit
PB: predicated region body
PF: predicated region fallthrough
CT: control target
= control target key end

     0   :  { %s2226_s0 = inlined_call_operand.hbm [shape: f32[16,32], index: 0, kind: input, shape index: {}]   ;;  %s2227_s1 = inlined_call_operand.hbm [shape: f32[32,32], index: 1, kind: input, shape index: {}]   ;;  %s2228_s2 = inlined_call_operand.hbm [shape: f32[1,32], index: 2, kind: input, shape index: {}]   ;;  %s2229_s3 = inlined_call_operand.hbm [shape: f32[1,32], index: 3, kind: input, shape index: {}]   ;;  %s2230_s4 = inlined_call_operand.hbm [shape: f32[1,32], index: 4, kind: input, shape index: {}]   ;;  %s2231_s5 = inlined_call_operand.hbm [shape: f32[32,16], index: 5, kind: input, shape index: {}]   ;;  %s2232_s6 = inlined_call_operand.hbm [shape: f32[16,256], index: 6, kind: input, shape index: {}]   ;;  %s2233_s7 = inlined_call_operand.hbm [shape: f32[1,256], index: 7, kind: input, shape index: {}]   ;;  %s2234_s8 = inlined_call_operand.hbm [shape: f32[16,256], index: 8, kind: output, shape index: {}]  }
   0x1   :  { %2265 = sst [smem:[#allocation41_spill]] %s2226_s0 }
   0x2   :  { %2266 = sst [smem:[#allocation42_spill]] %s2227_s1 }
   0x3   :  { %2267 = sst [smem:[#allocation43_spill]] %s2234_s8 }
   0x4   :  { %13 = vsyncpa [#allocation4], 0 }
   0x5   :  { %15 = vsyncpa [#allocation4 + $0x1], 0 }
   0x6   :  { %16 = vsyncpa [#allocation7], 0 }
   0x7   :  { %17 = vsyncpa [#allocation10], 0 }
   0x8   :  { %18 = vsyncpa [#allocation13], 0 }
   0x9   :  { %19 = vsyncpa [#allocation5], 0 }
   0xa   :  { %21 = vsyncpa [#allocation5 + $0x1], 0  ;;  %s1692_s27 = smov 0   ;;  %s1694_s28 = smov 0  }
   0xb   :  { %s1696_s29 = smov 0   ;;  %s1698_s30 = smov 0  }
   0xc   :  { %s1700_s9 = smov 0   ;;  %s1702_s10 = smov 0  }
   0xd   :  { %s1704_s11 = smov 0   ;;  %s1706_s12 = smov 0  }
   0xe   :  { %s1708_s13 = smov 0   ;;  %s1710_s14 = smov 0  }
   0xf   :  { %s1712_s15 = smov 0   ;;  %s1714_s16 = smov 0  }
  0x10   :  { %s1716_s17 = smov 0   ;;  %s1718_s18 = smov 0  }
  0x11 LB: > { %2268 = sst [smem:[#allocation23_spill]] %s1575_s27  ;;  %s1761_s19 = sadd.s32 4294967295, %s1627_s18   ;;  %s1627_s18 = sphi %s1718_s18, %s27_s18   ;;  %s1623_s17 = sphi %s1716_s17, %s2349_s17   ;;  %s1619_s16 = sphi %s1714_s16, %s2348_s16   ;;  %s1615_s15 = sphi %s1712_s15, %s2338_s15   ;;  %s1611_s14 = sphi %s1710_s14, %s2347_s14   ;;  %s1607_s13 = sphi %s1708_s13, %s2337_s13   ;;  %s1603_s12 = sphi %s1706_s12, %s2346_s12   ;;  %s1599_s11 = sphi %s1704_s11, %s2345_s11   ;;  %s1595_s10 = sphi %s1702_s10, %s2344_s10   ;;  %s1591_s9 = sphi %s1700_s9, %s2343_s9   ;;  %s1587_s30 = sphi %s1698_s30, %s2342_s30   ;;  %s1583_s29 = sphi %s1696_s29, %s2333_s29   ;;  %s1579_s28 = sphi %s1694_s28, %s2332_s28   ;;  %s1575_s27 = sphi %s1692_s27, %s2331_s27  }
  0x12   : > { %2269 = sst [smem:[#allocation24_spill]] %s1579_s28  ;;  %s36_s21 = sadd.s32 1, %s1619_s16 }
  0x13   : > { %2270 = sst [smem:[#allocation25_spill]] %s1583_s29  ;;  %s39_s22 = sadd.s32 1, %s1623_s17 }
  0x14   : > { %2271 = sst [smem:[#allocation26_spill]] %s1591_s9  ;;  %p37_p0 = scmp.ge.s32.totalorder %s36_s21, 2 }
  0x15   : > { %2272 = sst [smem:[#allocation27_spill]] %s1607_s13  ;;  %s46_s23 = sadd.s32 1, %s1607_s13 }
  0x16   : > { %2273 = sst [smem:[#allocation28_spill]] %s1611_s14  ;;  %p53_p1 = scmp.ne.s32.totalorder %s1607_s13, %s1603_s12 }
  0x17   : > { %2274 = sst [smem:[#allocation29_spill]] %s1615_s15  ;;  %p54_p2 = scmp.eq.s32.totalorder %s1627_s18, 0 }
  0x18   : > { %2275 = sst [smem:[#allocation30_spill]] %s1623_s17  ;;  %s2351_s21 = smov (%p37_p0, %s36_s21), 0 }
  0x19   : > { %2276 = sst [smem:[#allocation31_spill]] %s1627_s18  ;;  %s2353_s22 = smov (!%p37_p0, %s39_s22), %s1623_s17 }
  0x1a   : > { %2277 = sst [smem:[#allocation32_spill]] %s2351_s21  ;;  %p1775_p3 = por %p54_p2, %p53_p1 }
  0x1b   : > { %p59_p4 = scmp.ne.s32.totalorder %s1603_s12, %s1599_s11  ;;  %p41_p5 = scmp.ge.s32.totalorder %s2353_s22, 2 }
  0x1c   : > { %p2244_p6 = scmp.eq.s32.totalorder %s1761_s19, 0  ;;  %s174_s25 = ssub.s32 %s1619_s16, %s2351_s21 }
  0x1d   : > { %s177_s26 = sadd.s32 1, %s1595_s10  ;;  %s2355_s22 = smov (%p41_p5, %s2353_s22), 0 }
  0x1e   : > { %2279 = sst [smem:[#allocation33_spill]] %s2355_s22  ;;  %p1788_p7 = por %p2244_p6, %p59_p4 }
  0x1f   : > { %p175_p8 = scmp.eq.s32.totalorder %s174_s25, 0  ;;  %s43_s11 = ssub.s32 %s1623_s17, %s2355_s22 }
  0x20   : > { %s2280_s20 = scalar_select %p1788_p7, 1, 0 }
  0x21   : > { %p184_p9 = scmp.ne.s32.totalorder %s1595_s10, %s1591_s9  ;;  %p44_p10 = scmp.eq.s32.totalorder %s43_s11, 0 }
  0x22   : > { %2281 = sst [smem:[#allocation34_spill]] %s2280_s20  ;;  %p190_p11 = scmp.ne.s32.totalorder %s1591_s9, %s1587_s30 }
  0x23   : > { %s1799_s21 = scalar_select %p175_p8, %s1595_s10, %s177_s26  }
  0x24   : > { %s1802_s8 = scalar_select %p44_p10, %s1607_s13, %s46_s23  }
  0x25   : > { %2282 = sst [smem:[#allocation35_spill]] %s1799_s21  ;;  %p1806_p12 = por %p184_p9, %p54_p2 }
  0x26   : > { %2283 = sst [smem:[#allocation36_spill]] %s1802_s8  ;;  %p1812_p13 = por %p190_p11, %p2244_p6 }
  0x27   : > { %s228_s14 = sor.u32 %s174_s25, %s43_s11  ;;  %s231_s20 = sadd.s32 1, %s1583_s29 }
  0x28   : > { %s2285_s22 = scalar_select %p1812_p13, 1, 0 }
  0x29   : > { %p229_p0 = scmp.eq.s32.totalorder %s228_s14, 0  ;;  %p241_p1 = scmp.ne.s32.totalorder %s1583_s29, %s1579_s28 }
  0x2a   : > { %2286 = sst [smem:[#allocation37_spill]] %s2285_s22  ;;  %p242_p4 = scmp.eq.s32.totalorder %s1761_s19, 3 }
  0x2b   : > { %p247_p5 = scmp.ne.s32.totalorder %s1579_s28, %s1575_s27  ;;  %s2290_s26 = sadd.s32 4294967294, %s1627_s18  }
  0x2c   : > { %s1823_s30 = scalar_select %p229_p0, %s1583_s29, %s231_s20  }
  0x2d   : > { %p1825_p2 = por %p242_p4, %p241_p1  ;;  %p248_p8 = scmp.eq.s32.totalorder %s2290_s26, 3 }
  0x2e   : > { %2287 = sst [smem:[#allocation38_spill]] %s1823_s30  ;;  %p1098_p10 = scmp.lt.s32.totalorder %s1627_s18, 4 }
  0x2f   : > { %s2288_s23 = scalar_select %p1825_p2, 1, 0 }
  0x30   : > { %p1831_p9 = por %p248_p8, %p247_p5  ;;  %s327_s25 = sand.u32 1, %s1627_s18  }
  0x31   : > { %2289 = sst [smem:[#allocation39_spill]] %s2288_s23  ;;  %s329_s14 = sand.u32 1, %s1607_s13  }
  0x32   : > { %s2291_s8 = scalar_select %p1831_p9, 1, 0 }
  0x33   : > { %s951_s11 = sshll.u32 %s329_s14, 3  ;;  %s952_s21 = sshll.u32 %s1623_s17, 7 }
  0x34   : > { %2292 = sst [smem:[#allocation40_spill]] %s2291_s8  ;;  %s2293_s0 = sld [smem:[#allocation41_spill]] }
  0x35   : > { %s331_s30 = scalar_lea.vmem [#allocation3], %s951_s11  ;;  %p1848_p11 = pnand %p1098_p10, %p1775_p3 }
  0x36   : > { %s338_s26 = sshll.u32 %s331_s30, 4  ;;  %p1854_p0 = pnand %p1098_p10, %p1806_p12  ;;  %s1844_s26 = int_to_ptr.vmem [resolvable:$true] %s338_s26 }
  0x37   : > { %p1237_p4 = pneg %p1848_p11 }
  0x38   : > { %s2295_s9 = scalar_select %p1854_p0, 1, 0 }
  0x3a   : > { %s1842_s20 = scalar_lea.hbm %s2293_s0, %s952_s21  ;;  %s1858_s21 = scalar_lea.sflag [#allocation4], %s327_s25 }
  0x3b   : > { %s1235_s22 = scalar_lea.hbm %s1842_s20, 128  ;;  %s1240_s15 = scalar_lea.hbm %s2293_s0, 256 }
  0x3c   : > { %p1236_p1 = scmp.ne.s32.totalorder %s1842_s20, %s1235_s22  ;;  %p1241_p12 = scmp.lt.u32.totalorder %s1842_s20, %s2293_s0 }
  0x3d   : > { %p1242_p8 = scmp.lt.u32.totalorder %s1240_s15, %s1235_s22  ;;  %p1244_p6 = scmp.lt.u32.totalorder %s1235_s22, %s1842_s20 }
  0x3e   : > { %p1238_p5 = pnand %p1237_p4, %p1236_p1 }
  0x3f   : > { %p1243_p10 = por %p1242_p8, %p1241_p12 }
  0x40   : > { %p1239_p3 = pneg %p1238_p5 }
  0x41   : > { %p1245_p9 = por %p1244_p6, %p1243_p10 }
  0x43   : > { %p1246_p2 = pnand %p1245_p9, %p1239_p3 }
  0x45   : > { %1249 = shalt.err (!%p1246_p2)
}
  0x46   : > { %s1250_s25 = scalar_lea.vmem %s1844_s26, 128  ;;  %s1629_s24 = smov [#allocation3]  }
  0x47   : > { %p1251_p1 = scmp.ne.s32.totalorder %s1844_s26, %s1250_s25  ;;  %s1255_s30 = sshll.u32 %s1629_s24, 4  ;;  %s1256_s30 = int_to_ptr.vmem [resolvable:$false] %s1255_s30 }
  0x48   : > { %s1257_s14 = scalar_lea.vmem %s1256_s30, 256  ;;  %p1258_p7 = scmp.lt.s32.totalorder %s1844_s26, %s1256_s30 }
  0x49   : > { %p1253_p5 = pnand %p1251_p1, %p1237_p4  ;;  %p1259_p12 = scmp.lt.s32.totalorder %s1257_s14, %s1250_s25 }
  0x4b   : > { %p1254_p13 = pneg %p1253_p5  ;;  %p1260_p8 = por %p1259_p12, %p1258_p7 }
  0x4d   : > { %p1261_p6 = pnand %p1260_p8, %p1254_p13 }
  0x4f   : > { %1264 = shalt.err (!%p1261_p6)
}
  0x50   : > { %1082 = dma.hbm_to_vmem [thread:$0]  (!%p1848_p11), %s1842_s20, 128, %s1844_s26, %s1858_s21  }
  0x51   : > { %p944_p2 = scmp.ge.s32.totalorder %s1627_s18, 1  ;;  %p255_p9 = scmp.lt.s32.totalorder %s1627_s18, 5 }
  0x52   : > { %s1630_s22 = smov [#allocation6]   ;;  %s1631_s29 = smov [#allocation9]  }
  0x53   : > { %s267_s15 = sshll.u32 %s1630_s22, 4  ;;  %p1888_p4 = pnand %p944_p2, %p255_p9  ;;  %s1892_s15 = int_to_ptr.vmem [resolvable:$true] %s267_s15 }
  0x54   : > { %s292_s25 = sshll.u32 %s1631_s29, 4  ;;  %s2254_s24 = sand.u32 1, %s1595_s10   ;;  %s1896_s25 = int_to_ptr.vmem [resolvable:$true] %s292_s25 }
  0x55   : > { %s2296_s11 = scalar_select %p1888_p4, 1, 0 }
  0x56   : > { %p1063_p7 = pneg %p1888_p4  ;;  %p2297_p13 = scmp.eq.s32.totalorder %s1761_s19, 0 }
  0x57   : > { %s1907_s26 = sshll.u32 %s2254_s24, 4  ;;  %s954_s30 = sshll.u32 %s1619_s16, 7 }
  0x58   : > { %p1901_p11 = pnand %p1063_p7, %p2297_p13  ;;  %s1913_s0 = scalar_lea.hbm %s2232_s6, %s954_s30 }
  0x59   : > { %s2299_s1 = sld [smem:[#allocation42_spill]] }
  0x5a   : > { %s2298_s20 = scalar_select %p1901_p11, 1, 0 }
  0x5b   : > { %p1923_p10 = pneg %p1901_p11 }
  0x5f   : > { %s1265_s13 = scalar_lea.hbm %s2299_s1, 512 }
  0x60   : > { %p1266_p3 = scmp.ne.s32.totalorder %s2299_s1, %s1265_s13  ;;  %p1272_p12 = scmp.lt.u32.totalorder %s1265_s13, %s2299_s1 }
  0x62   : > { %p1268_p1 = pnand %p1923_p10, %p1266_p3 }
  0x64   : > { %p1269_p5 = pneg %p1268_p1 }
  0x66   : > { %p1274_p8 = pnand %p1272_p12, %p1269_p5 }
  0x68   : > { %1277 = shalt.err (!%p1274_p8)
}
  0x69   : > { %s1278_s8 = scalar_lea.vmem %s1892_s15, 512  ;;  %p1286_p7 = scmp.lt.s32.totalorder %s1892_s15, %s1892_s15 }
  0x6a   : > { %p1279_p6 = scmp.ne.s32.totalorder %s1892_s15, %s1278_s8  ;;  %p1287_p13 = scmp.lt.s32.totalorder %s1278_s8, %s1278_s8 }
  0x6c   : > { %p1281_p2 = pnand %p1279_p6, %p1923_p10  ;;  %p1288_p3 = por %p1287_p13, %p1286_p7 }
  0x6e   : > { %p1282_p9 = pneg %p1281_p2 }
  0x70   : > { %p1289_p1 = pnand %p1288_p3, %p1282_p9 }
  0x72   : > { %1292 = shalt.err (!%p1289_p1)
}
  0x73   : > { %s1632_s27 = smov 128   ;;  %s1633_s13 = smov 8  }
  0x74   : > { %1066 = dma.hbm_to_vmem [thread:$0]  (!%p1901_p11), %s2299_s1, 512, %s1892_s15, [#allocation7], %s1632_s27, %s1632_s27, %s1633_s13  }
  0x75   : > { %s1293_s30 = scalar_lea.hbm %s2229_s3, 16 }
  0x76   : > { %p1294_p5 = scmp.ne.s32.totalorder %s2229_s3, %s1293_s30  ;;  %p1300_p6 = scmp.lt.u32.totalorder %s1293_s30, %s2229_s3 }
  0x78   : > { %p1296_p12 = pnand %p1294_p5, %p1923_p10 }
  0x7a   : > { %p1297_p8 = pneg %p1296_p12 }
  0x7c   : > { %p1302_p2 = pnand %p1300_p6, %p1297_p8 }
  0x7e   : > { %1305 = shalt.err (!%p1302_p2)
}
  0x7f   : > { %s1306_s15 = scalar_lea.vmem %s1896_s25, 16  ;;  %s1313_s24 = scalar_lea.vmem %s1896_s25, 32 }
  0x80   : > { %p1307_p9 = scmp.ne.s32.totalorder %s1896_s25, %s1306_s15  ;;  %p1314_p3 = scmp.lt.s32.totalorder %s1896_s25, %s1896_s25 }
  0x81   : > { %p1315_p1 = scmp.lt.s32.totalorder %s1313_s24, %s1306_s15 }
  0x82   : > { %p1309_p7 = pnand %p1307_p9, %p1923_p10 }
  0x83   : > { %p1316_p5 = por %p1315_p1, %p1314_p3 }
  0x84   : > { %p1310_p13 = pneg %p1309_p7 }
  0x86   : > { %p1317_p12 = pnand %p1316_p5, %p1310_p13 }
  0x88   : > { %1320 = shalt.err (!%p1317_p12)
}
  0x89   : > { %1072 = dma.hbm_to_vmem [thread:$0]  (!%p1901_p11), %s2229_s3, 16, %s1896_s25, [#allocation10]  }
  0x8a   : > { %s349_s17 = scalar_lea.vmem [#allocation14], %s1907_s26  ;;  %s1321_s29 = scalar_lea.hbm %s1913_s0, 256 }
  0x8b   : > { %s355_s22 = sshll.u32 %s349_s17, 4  ;;  %p1322_p8 = scmp.ne.s32.totalorder %s1913_s0, %s1321_s29  ;;  %s1972_s22 = int_to_ptr.vmem [resolvable:$true] %s355_s22 }
  0x8c   : > { %p2262_p6 = pneg %p1854_p0  ;;  %s1326_s8 = scalar_lea.hbm %s2232_s6, 512 }
  0x8d   : > { %p1327_p7 = scmp.lt.u32.totalorder %s1913_s0, %s2232_s6  ;;  %p1328_p13 = scmp.lt.u32.totalorder %s1326_s8, %s1321_s29 }
  0x8e   : > { %p1324_p2 = pnand %p2262_p6, %p1322_p8  ;;  %p1330_p1 = scmp.lt.u32.totalorder %s1321_s29, %s1913_s0 }
  0x8f   : > { %p1329_p3 = por %p1328_p13, %p1327_p7 }
  0x90   : > { %p1325_p9 = pneg %p1324_p2 }
  0x91   : > { %p1331_p5 = por %p1330_p1, %p1329_p3 }
  0x93   : > { %p1332_p12 = pnand %p1331_p5, %p1325_p9 }
  0x95   : > { %1335 = shalt.err (!%p1332_p12)
}
  0x96   : > { %s1336_s25 = scalar_lea.vmem %s1972_s22, 256  ;;  %s1634_s26 = smov [#allocation14]  }
  0x97   : > { %p1337_p8 = scmp.ne.s32.totalorder %s1972_s22, %s1336_s25  ;;  %s1341_s28 = sshll.u32 %s1634_s26, 4  ;;  %s1342_s28 = int_to_ptr.vmem [resolvable:$false] %s1341_s28 }
  0x98   : > { %s1343_s23 = scalar_lea.vmem %s1342_s28, 512  ;;  %p1344_p11 = scmp.lt.s32.totalorder %s1972_s22, %s1342_s28 }
  0x99   : > { %p1339_p2 = pnand %p1337_p8, %p2262_p6  ;;  %p1345_p7 = scmp.lt.s32.totalorder %s1343_s23, %s1336_s25 }
  0x9b   : > { %p1340_p4 = pneg %p1339_p2  ;;  %p1346_p13 = por %p1345_p7, %p1344_p11 }
  0x9d   : > { %p1347_p3 = pnand %p1346_p13, %p1340_p4 }
  0x9f   : > { %1350 = shalt.err (!%p1347_p3)
}
  0xa0   : > { %s1635_s17 = smov 256   ;;  %s1636_s29 = smov [#allocation8]  }
  0xa1   : > { %1085 = dma.hbm_to_vmem [thread:$0]  (!%p1854_p0), %s1913_s0, 256, %s1972_s22, %s1858_s21, %s1635_s17, %s1632_s27, %s1633_s13  }
  0xa2   : > { %s281_s14 = sshll.u32 %s1636_s29, 4  ;;  %s1637_s30 = smov [#allocation11]   ;;  %s282_s14 = int_to_ptr.vmem [resolvable:$true] %s281_s14 }
  0xa3   : > { %s303_s8 = sshll.u32 %s1637_s30, 4  ;;  %s1351_s25 = scalar_lea.hbm %s2228_s2, 16  ;;  %s304_s8 = int_to_ptr.vmem [resolvable:$true] %s303_s8 }
  0xa4   : > { %p1352_p4 = scmp.ne.s32.totalorder %s2228_s2, %s1351_s25  ;;  %p1358_p1 = scmp.lt.u32.totalorder %s1351_s25, %s2228_s2 }
  0xa6   : > { %p1354_p11 = pnand %p1352_p4, %p1923_p10 }
  0xa8   : > { %p1355_p9 = pneg %p1354_p11 }
  0xaa   : > { %p1360_p5 = pnand %p1358_p1, %p1355_p9 }
  0xac   : > { %1363 = shalt.err (!%p1360_p5)
}
  0xad   : > { %s1364_s0 = scalar_lea.vmem %s282_s14, 16  ;;  %s1371_s22 = scalar_lea.vmem %s282_s14, 32 }
  0xae   : > { %p1365_p12 = scmp.ne.s32.totalorder %s282_s14, %s1364_s0  ;;  %p1372_p7 = scmp.lt.s32.totalorder %s282_s14, %s282_s14 }
  0xaf   : > { %p1373_p13 = scmp.lt.s32.totalorder %s1371_s22, %s1364_s0 }
  0xb0   : > { %p1367_p8 = pnand %p1365_p12, %p1923_p10 }
  0xb1   : > { %p1374_p3 = por %p1373_p13, %p1372_p7 }
  0xb2   : > { %p1368_p2 = pneg %p1367_p8 }
  0xb4   : > { %p1375_p6 = pnand %p1374_p3, %p1368_p2 }
  0xb6   : > { %1378 = shalt.err (!%p1375_p6)
}
  0xb7   : > { %p2301_p4 = scmp.ne.s32.totalorder %s2298_s20, 0  ;;  %s1379_s15 = scalar_lea.hbm %s2230_s4, 16 }
  0xb8   : > { %p1380_p11 = scmp.ne.s32.totalorder %s2230_s4, %s1379_s15  ;;  %p1386_p6 = scmp.lt.u32.totalorder %s1379_s15, %s2230_s4 }
  0xb9   : > { %1069 = dma.hbm_to_vmem [thread:$0]  (!%p2301_p4), %s2228_s2, 16, %s282_s14, [#allocation7]  }
  0xba   : > { %p1382_p9 = pnand %p1380_p11, %p1923_p10 }
  0xbc   : > { %p1383_p1 = pneg %p1382_p9 }
  0xbe   : > { %p1388_p5 = pnand %p1386_p6, %p1383_p1 }
  0xc0   : > { %1391 = shalt.err (!%p1388_p5)
}
  0xc1   : > { %s1392_s23 = scalar_lea.vmem %s304_s8, 16  ;;  %s1399_s14 = scalar_lea.vmem %s304_s8, 32 }
  0xc2   : > { %p1393_p12 = scmp.ne.s32.totalorder %s304_s8, %s1392_s23  ;;  %p1400_p7 = scmp.lt.s32.totalorder %s304_s8, %s304_s8 }
  0xc3   : > { %p1401_p13 = scmp.lt.s32.totalorder %s1399_s14, %s1392_s23 }
  0xc4   : > { %p1395_p8 = pnand %p1393_p12, %p1923_p10 }
  0xc5   : > { %p1402_p3 = por %p1401_p13, %p1400_p7 }
  0xc6   : > { %p1396_p2 = pneg %p1395_p8 }
  0xc8   : > { %p1403_p0 = pnand %p1402_p3, %p1396_p2 }
  0xca   : > { %1406 = shalt.err (!%p1403_p0)
}
  0xcb   : > { %1075 = dma.hbm_to_vmem [thread:$0]  (!%p2301_p4), %s2230_s4, 16, %s304_s8, [#allocation10]  }
  0xcc   : > { %s1638_s17 = smov [#allocation12]   ;;  %s955_s1 = sshll.u32 %s1619_s16, 4 }
  0xcd   : > { %s313_s29 = sshll.u32 %s1638_s17, 4  ;;  %s1407_s24 = scalar_lea.hbm %s2231_s5, 512  ;;  %s314_s29 = int_to_ptr.vmem [resolvable:$true] %s313_s29 }
  0xce   : > { %p1408_p0 = scmp.ne.s32.totalorder %s2231_s5, %s1407_s24  ;;  %p1414_p1 = scmp.lt.u32.totalorder %s1407_s24, %s2231_s5 }
  0xd0   : > { %p1410_p11 = pnand %p1408_p0, %p1923_p10 }
  0xd2   : > { %p1411_p9 = pneg %p1410_p11 }
  0xd4   : > { %p1416_p6 = pnand %p1414_p1, %p1411_p9 }
  0xd6   : > { %1419 = shalt.err (!%p1416_p6)
}
  0xd7   : > { %s1420_s8 = scalar_lea.vmem %s314_s29, 512  ;;  %p1428_p2 = scmp.lt.s32.totalorder %s314_s29, %s314_s29 }
  0xd8   : > { %p1421_p5 = scmp.ne.s32.totalorder %s314_s29, %s1420_s8  ;;  %p1429_p7 = scmp.lt.s32.totalorder %s1420_s8, %s1420_s8 }
  0xda   : > { %p1423_p12 = pnand %p1421_p5, %p1923_p10  ;;  %p1430_p13 = por %p1429_p7, %p1428_p2 }
  0xdc   : > { %p1424_p8 = pneg %p1423_p12 }
  0xde   : > { %p1431_p3 = pnand %p1430_p13, %p1424_p8 }
  0xe0   : > { %1434 = shalt.err (!%p1431_p3)
}
  0xe1   : > { %1078 = dma.hbm_to_vmem [thread:$0]  (!%p2301_p4), %s2231_s5, 512, %s314_s29, [#allocation13], %s1632_s27, %s1632_s27, %s1633_s13  }
  0xe2   : > { %s2063_s17 = scalar_lea.hbm %s2233_s7, %s955_s1  ;;  %s2302_s30 = sand.u32 1, %s1595_s10  }
  0xe3   : > { %s368_s20 = scalar_lea.vmem [#allocation15], %s2302_s30  ;;  %s1435_s24 = scalar_lea.hbm %s2063_s17, 16 }
  0xe4   : > { %s375_s15 = sshll.u32 %s368_s20, 4  ;;  %p1436_p10 = scmp.ne.s32.totalorder %s2063_s17, %s1435_s24  ;;  %s376_s15 = int_to_ptr.vmem [resolvable:$true] %s375_s15 }
  0xe5   : > { %p2303_p0 = scmp.ne.s32.totalorder %s2295_s9, 0  ;;  %s1440_s29 = scalar_lea.hbm %s2233_s7, 32 }
  0xe6   : > { %p1441_p4 = scmp.lt.u32.totalorder %s2063_s17, %s2233_s7  ;;  %p1442_p6 = scmp.lt.u32.totalorder %s1440_s29, %s1435_s24 }
  0xe7   : > { %p2304_p11 = pneg %p2303_p0  ;;  %p1444_p12 = scmp.lt.u32.totalorder %s1435_s24, %s2063_s17 }
  0xe8   : > { %p1443_p5 = por %p1442_p6, %p1441_p4 }
  0xe9   : > { %p1438_p9 = pnand %p1436_p10, %p2304_p11 }
  0xea   : > { %p1445_p8 = por %p1444_p12, %p1443_p5 }
  0xeb   : > { %p1439_p1 = pneg %p1438_p9 }
  0xed   : > { %p1446_p2 = pnand %p1445_p8, %p1439_p1 }
  0xef   : > { %1449 = shalt.err (!%p1446_p2)
}
  0xf0   : > { %s1450_s26 = scalar_lea.vmem %s376_s15, 16  ;;  %p2305_p13 = pmov %p2304_p11 }
  0xf1   : > { %p1451_p7 = scmp.ne.s32.totalorder %s376_s15, %s1450_s26  ;;  %s1639_s28 = smov [#allocation15]  }
  0xf2   : > { %s1455_s23 = sshll.u32 %s1639_s28, 4  ;;  %s1456_s23 = int_to_ptr.vmem [resolvable:$false] %s1455_s23 }
  0xf3   : > { %p1453_p3 = pnand %p1451_p7, %p2305_p13  ;;  %s1457_s8 = scalar_lea.vmem %s1456_s23, 32 }
  0xf4   : > { %p1458_p11 = scmp.lt.s32.totalorder %s376_s15, %s1456_s23  ;;  %p1459_p9 = scmp.lt.s32.totalorder %s1457_s8, %s1450_s26 }
  0xf5   : > { %p1454_p10 = pneg %p1453_p3 }
  0xf6   : > { %p1460_p4 = por %p1459_p9, %p1458_p11 }
  0xf8   : > { %p1461_p6 = pnand %p1460_p4, %p1454_p10 }
  0xfa   : > { %1464 = shalt.err (!%p1461_p6)
}
  0xfb   : > { %1088 = dma.hbm_to_vmem [thread:$0]  (!%p2303_p0), %s2063_s17, 16, %s376_s15, %s1858_s21  }
  0xfc   : > { %p2306_p1 = scmp.ne.s32.totalorder %s2296_s11, 0 }
  0xfd   : > { %s2307_s14 = sld [smem:[#allocation34_spill]] (!%p2306_p1)  ;;  %s386_s0 = sand.u32 (!%p2306_p1), 1, %s1761_s19  }
  0xfe   : > { %384 = sbr.rel (%p2306_p1) target bundleno = 1291 (0x50b), region = 52  ;;  %s388_s22 = sand.u32 (!%p2306_p1), 1, %s1603_s12  }
  0xff   : > { %s2091_s18 = sshll.u32 (!%p2306_p1), %s388_s22, 3  ;;  %s387_s30 = scalar_lea.sflag (!%p2306_p1), [#allocation4], %s386_s0 }
 0x100   : > { %s390_s20 = scalar_lea.vmem (!%p2306_p1), [#allocation3], %s2091_s18 }
 0x103   : > { %p2308_p5 = scmp.ne.s32.totalorder (!%p2306_p1), %s2307_s14, 0 }
 0x105   : > { %1550 = dma.done.wait (%p2308_p5), %s387_s30, 128  }
 0x106   : > { %1552 = vsyncadd (%p2308_p5), %s387_s30, 4294967168  ;;  %p2309_p0 = scmp.eq.s32.totalorder %s1761_s19, 0 }
 0x108   : > { %1554 = dma.done.wait (%p2309_p0), [#allocation7], 528   ;;  %p2310_p12 = pmov %p2309_p0 }
 0x109   : > { %p2311_p8 = pmov %p2309_p0 }
 0x10a   : > { %1556 = vsyncadd (%p2310_p12), [#allocation7], 4294966768 }
 0x10b   : > { %1558 = dma.done.wait (%p2311_p8), [#allocation10], 32   ;;  %p2312_p2 = pmov %p2309_p0 }
 0x10c   : > { %p2313_p7 = pmov %p2309_p0 }
 0x10d   : > { %1560 = vsyncadd (%p2312_p2), [#allocation10], 4294967264 }
 0x10e   : > { %1562 = dma.done.wait (%p2313_p7), [#allocation13], 512   ;;  %p2314_p13 = pmov %p2309_p0 }
 0x10f   : > { %s2315_s9 = sld [smem:[#allocation26_spill]]  ;;  %s2316_s21 = sld [smem:[#allocation37_spill]] }
 0x110   : > { %1564 = vsyncadd (%p2314_p13), [#allocation13], 4294966784 }
 0x115   : > { %s417_s11 = sand.u32 1, %s2315_s9   ;;  %p2317_p3 = scmp.ne.s32.totalorder %s2316_s21, 0 }
 0x116   : > { %s2111_s17 = sshll.u32 %s417_s11, 4 }
 0x117   : > { %s419_s15 = scalar_lea.vmem [#allocation14], %s2111_s17 }
 0x118   : > { %1566 = dma.done.wait (%p2317_p3), %s387_s30, 272  }
 0x119   : > { %1568 = vsyncadd (%p2317_p3), %s387_s30, 4294967024  ;;  %s2318_s24 = sld [smem:[#allocation24_spill]]  ;;  %s2123_s19 = scalar_lea.vmem [#allocation15], %s417_s11 }
 0x11a   : > { %s2319_s1 = sld [smem:[#allocation28_spill]] }
 0x11f   : > { %s466_s27 = sand.u32 1, %s2318_s24  }
 0x120   : > { %s2121_s13 = sshll.u32 %s466_s27, 3  ;;  %p965_p10 = scmp.ne.s32.totalorder %s2319_s1, 0 }
 0x121   : > { %s468_s29 = scalar_lea.vmem [#allocation16], %s2121_s13  ;;  %v474_v0 = vld [vmem:[#allocation6] sm:$0xff] (!%p965_p10)  ;;  %v475_v1 = vld [vmem:[#allocation6 + $0x8] sm:$0xff] (!%p965_p10)  ;;  %v476_v2 = vld [vmem:[#allocation6 + $0x10] sm:$0xff] (!%p965_p10)  ;;  %v1640_v3 = vmov (!%p965_p10), 0.0|0.0   ;;  %vm1641_vm0 = vmmov (!%p965_p10), 0  }
 0x122   : > { %472 = sbr.rel (%p965_p10) target bundleno = 1056 (0x420), region = 88  ;;  %1020 = vmatprep.subr.bf16.mxu0 (!%p965_p10), %v1640_v3  ;;  %v1021_v4 = vpack.c.bf16 (!%p965_p10), %v475_v1, %v474_v0  ;;  %v477_v5 = vld [vmem:[#allocation6 + $0x18] sm:$0xff] (!%p965_p10)  ;;  %v1642_v6 = vmov (!%p965_p10), 0.0   ;;  %1026 = vmatprep.subr.bf16.mxu1 (!%p965_p10), %v1640_v3  ;;  %vm485_vm1 = vcmask (!%p965_p10), 261120   ;;  %v966_v9 = vld [vmem:[#allocation8] ss:$0 sm:$0xff] (!%p965_p10) }
 0x123   : > { %999 = vmatprep.mubr.msk.f32.mxu0 (!%p965_p10), %vm1641_vm0, %v1642_v6  ;;  %1010 = vmatprep.mubr.msk.f32.mxu1 (!%p965_p10), %vm1641_vm0, %v1642_v6  ;;  %v1024_v7 = vpack.c.bf16 (!%p965_p10), %v477_v5, %v476_v2  ;;  %v473_v8 = vld [vmem:[%s390_s20] sm:$0xff] (!%p965_p10)  ;;  %v594_v24 = vld [vmem:[#allocation12] sm:$0xff] (!%p965_p10)  ;;  %v968_v34 = vld [vmem:[#allocation9] ss:$0 sm:$0xff] (!%p965_p10)  ;;  %vm671_vm2 = vcmask (!%p965_p10), 130048  }
 0x124   : > { %1022 = vmatpush3.bf16.msra.mxu0 (!%p965_p10), %v1021_v4  ;;  %v595_v25 = vld [vmem:[#allocation12 + $0x8] sm:$0xff] (!%p965_p10)  ;;  %v596_v26 = vld [vmem:[#allocation12 + $0x10] sm:$0xff] (!%p965_p10)  ;;  %v597_v28 = vld [vmem:[#allocation12 + $0x18] sm:$0xff] (!%p965_p10) }
 0x125   : > { %1023 = vmatprep.subr.bf16.mxu0 (!%p965_p10), %v1640_v3  ;;  %v1027_v27 = vpack.c.bf16 (!%p965_p10), %v595_v25, %v594_v24  ;;  %v1030_v29 = vpack.c.bf16 (!%p965_p10), %v597_v28, %v596_v26  ;;  %v969_v36 = vld [vmem:[#allocation11] ss:$0 sm:$0xff] (!%p965_p10) }
 0x127   : > { %1028 = vmatpush3.bf16.msra.mxu1 (!%p965_p10), %v1027_v27 }
 0x128   : > { %1025 = vmatpush3.bf16.msra.mxu0 (!%p965_p10), %v1024_v7  ;;  %1029 = vmatprep.subr.bf16.mxu1 (!%p965_p10), %v1640_v3 }
 0x12b   : > { %1000 = vmatmul.mubr.msk.f32.vlgmr.msra.gmra.mrb[0].mxu0 %vm485_vm1, %v473_v8  ;;  %1031 = vmatpush3.bf16.msra.mxu1 %v1030_v29 }
 0x1fe   : > { %v555_v10 = vpop.f32.mrb[0].mxu0 }
 0x1ff   : > { %v556_v11 = vadd.f32 %v966_v9, %v555_v10  ;;  %v1001_v12 = vpop.f32.mrb[1].mxu0 }
 0x201   : > { %v560_v13 = vmul.f32 0.70710677, %v556_v11  ;;  %v559_v15 = vmul.f32 0.5, %v556_v11 }
 0x203   : > { %1231 = verf.f32 %v560_v13 }
 0x20d   : > { %v1232_v14 = vpop.eup %1231 }
 0x20e   : > { %v562_v16 = vadd.f32 1.0, %v1232_v14 }
 0x210   : > { %v563_v17 = vmul.f32 %v562_v16, %v559_v15 }
 0x212   : > { %v564_v18 = vsel %vm485_vm1, %v563_v17, 0.0 }
 0x213   : > { %565 = vadd.xlane.f32.xlu0 %v564_v18 }
 0x2a0   : > { %v566_v19 = vpop.xlane.xlu0 %565 }
 0x2a1   : > { %v568_v20 = vmul.f32 0.03125, %v566_v19 }
 0x2a3   : > { %v569_v21 = vsub.f32 %v563_v17, %v568_v20 }
 0x2a5   : > { %v570_v22 = vmul.f32 %v569_v21, %v569_v21 }
 0x2a7   : > { %v571_v23 = vsel %vm485_vm1, %v570_v22, 0.0 }
 0x2a8   : > { %572 = vadd.xlane.f32.xlu0 %v571_v23 }
 0x335   : > { %v573_v30 = vpop.xlane.xlu0 %572 }
 0x336   : > { %v574_v31 = vmul.f32 0.03125, %v573_v30 }
 0x338   : > { %v575_v32 = vadd.f32 1e-05, %v574_v31 }
 0x33a   : > { %1233 = vrsqrt.f32 %v575_v32 }
 0x344   : > { %v1234_v33 = vpop.eup %1233 }
 0x345   : > { %v577_v35 = vmul.f32 %v1234_v33, %v569_v21 }
 0x347   : > { %v585_v37 = vmul.f32 %v968_v34, %v577_v35 }
 0x349   : > { %v593_v38 = vadd.f32 %v969_v36, %v585_v37 }
 0x34b   : > { %1011 = vmatmul.mubr.msk.f32.vlgmr.msra.gmra.mrb[0].mxu1 %vm485_vm1, %v593_v38 }
 0x41e   : > { %v667_v39 = vpop.f32.mrb[0].mxu1 }
 0x41f   : > { %672 = vst.msk [vmem:[#allocation2] sm:$0xff] %vm671_vm2, %v667_v39  ;;  %v1012_v40 = vpop.f32.mrb[1].mxu1 }
 0x420 PF: > { %s2320_s25 = sld [smem:[#allocation29_spill]]  ;;  %s2321_s26 = sld [smem:[#allocation28_spill]]  ;;  %v674_v41 = vld [vmem:[%s419_s15] sm:$0xff]  ;;  %v675_v42 = vld [vmem:[%s419_s15 + $0x8] sm:$0xff]  ;;  %v1643_v43 = vmov 0.0|0.0   ;;  %vm1644_vm3 = vmmov 0  }
 0x421   : > { %1032 = vmatprep.subr.bf16.mxu0 %v1643_v43  ;;  %v1033_v44 = vpack.c.bf16 %v675_v42, %v674_v41  ;;  %v1645_v45 = vmov 0.0   ;;  %vm683_vm4 = vcmask 130048   ;;  %s2323_s23 = sld [smem:[#allocation39_spill]]  ;;  %v971_v47 = vld [vmem:[%s2123_s19] ss:$0 sm:$0xff]  ;;  %s774_s22 = sshll.u32 %s468_s29, 4  ;;  %s2147_s22 = int_to_ptr.vmem [resolvable:$true] %s774_s22 }
 0x422   : > { %1017 = vmatprep.mubr.msk.f32.mxu0 %vm1644_vm3, %v1645_v45  ;;  %s2324_s20 = sld [smem:[#allocation43_spill]]  ;;  %s759_s21 = scalar_lea.sflag [#allocation5], %s466_s27 }
 0x423   : > { %1034 = vmatpush3.bf16.msra.mxu0 %v1033_v44  ;;  %s1465_s11 = scalar_lea.vmem %s2147_s22, 128  ;;  %s1646_s17 = smov [#allocation16]  }
 0x424   : > { %p1466_p11 = scmp.ne.s32.totalorder %s2147_s22, %s1465_s11  ;;  %s1469_s15 = sshll.u32 %s1646_s17, 4  ;;  %s1470_s15 = int_to_ptr.vmem [resolvable:$false] %s1469_s15 }
 0x425   : > { %s1471_s24 = scalar_lea.vmem %s1470_s15, 256  ;;  %p1472_p1 = scmp.lt.s32.totalorder %s2147_s22, %s1470_s15 }
 0x426   : > { %v673_v46 = vld [vmem:[#allocation2] sm:$0xff]  ;;  %s974_s8 = sshll.u32 %s2320_s25, 1  ;;  %p1473_p5 = scmp.lt.s32.totalorder %s1471_s24, %s1465_s11 }
 0x427   : > { %1018 = vmatmul.mubr.msk.f32.vlgmr.msra.gmra.mrb[0].mxu0 %vm683_vm4, %v673_v46  ;;  %s770_s14 = sadd.s32 %s2321_s26, %s974_s8  ;;  %p2325_p9 = scmp.ne.s32.totalorder %s2323_s23, 0 }
 0x428   : > { %s975_s0 = sshll.u32 %s770_s14, 7  ;;  %p1474_p0 = por %p1473_p5, %p1472_p1 }
 0x429   : > { %s2145_s9 = scalar_lea.hbm %s2324_s20, %s975_s0  ;;  %p1467_p4 = pnand %p1466_p11, %p2325_p9 }
 0x42b   : > { %p1468_p6 = pneg %p1467_p4 }
 0x42d   : > { %p1475_p12 = pnand %p1474_p0, %p1468_p6 }
 0x4fa   : > { %v753_v48 = vpop.f32.mrb[0].mxu0 }
 0x4fb   : > { %v754_v49 = vadd.f32 %v971_v47, %v753_v48  ;;  %v1019_v50 = vpop.f32.mrb[1].mxu0 }
 0x4fd   : > { %757 = vst [vmem:[%s468_s29] sm:$0xff] %v754_v49 }
 0x4fe   : > { %1478 = shalt.err (!%p1475_p12)
}
 0x4ff   : > { %s1479_s27 = scalar_lea.hbm %s2145_s9, 128  ;;  %s1483_s29 = scalar_lea.hbm %s2324_s20, 512 }
 0x500   : > { %p1480_p8 = scmp.ne.s32.totalorder %s2145_s9, %s1479_s27  ;;  %p1484_p13 = scmp.lt.u32.totalorder %s2145_s9, %s2324_s20 }
 0x501   : > { %p1485_p3 = scmp.lt.u32.totalorder %s1483_s29, %s1479_s27  ;;  %p1487_p11 = scmp.lt.u32.totalorder %s1479_s27, %s2145_s9 }
 0x502   : > { %p1481_p2 = pnand %p1480_p8, %p2325_p9 }
 0x503   : > { %p1486_p10 = por %p1485_p3, %p1484_p13 }
 0x504   : > { %p1482_p7 = pneg %p1481_p2 }
 0x505   : > { %p1488_p4 = por %p1487_p11, %p1486_p10 }
 0x507   : > { %p1489_p6 = pnand %p1488_p4, %p1482_p7 }
 0x509   : > { %1492 = shalt.err (!%p1489_p6)
}
 0x50a   : > { %1061 = dma.vmem_to_hbm [thread:$0]  (%p2325_p9), %s2147_s22, 128, %s2145_s9, %s759_s21  }
 0x50b PF: > { %s2326_s26 = sld [smem:[#allocation31_spill]]  ;;  %s2327_s28 = sld [smem:[#allocation23_spill]] }
 0x50c   : > { %s2328_s8 = sld [smem:[#allocation40_spill]] }
 0x511   : > { %p1104_p1 = scmp.ge.s32.totalorder %s2326_s26, 2  ;;  %s786_s14 = sand.u32 1, %s2327_s28  }
 0x512   : > { %p2329_p5 = scmp.ne.s32.totalorder %s2328_s8, 0  ;;  %s787_s0 = scalar_lea.sflag [#allocation5], %s786_s14 }
 0x514   : > { %p1090_p0 = pnand %p1104_p1, %p2329_p5 }
 0x516   : > { %1570 = dma.done.wait (!%p1090_p0), %s787_s0, 128  }
 0x517   : > { %1572 = vsyncadd (!%p1090_p0), %s787_s0, 4294967168  ;;  %s27_s18 = sadd.s32 1, %s2326_s26   ;;  %s2331_s27 = sld [smem:[#allocation24_spill]] }
 0x518   : > { %p2179_p12 = scmp.ge.s32.totalorder %s27_s18, 6   ;;  %s2332_s28 = sld [smem:[#allocation25_spill]] }
 0x519   : > { %s2333_s29 = sld [smem:[#allocation38_spill]]  ;;  %s2334_s23 = sld [smem:[#allocation26_spill]] }
 0x51a   : > { %s2335_s22 = sld [smem:[#allocation35_spill]]  ;;  %s2336_s21 = sld [smem:[#allocation27_spill]] }
 0x51b   : > { %s2337_s13 = sld [smem:[#allocation36_spill]]  ;;  %s2338_s15 = sld [smem:[#allocation30_spill]] }
 0x51c   : > { %s2339_s17 = sld [smem:[#allocation32_spill]]  ;;  %s2340_s24 = sld [smem:[#allocation33_spill]] }
 0x51d   : > { %s2343_s9 = smov %s1595_s10  ;;  %s2345_s11 = smov %s1603_s12 }
 0x51e   : > { %s2347_s14 = smov %s1619_s16  ;;  %26 = sbr.rel (!%p2179_p12) target bundleno = 17 (0x11), region = 143 }
 0x51f   : > { %s2342_s30 = smov %s2334_s23 }
 0x520   : > { %s2344_s10 = smov %s2335_s22  ;;  %s2346_s12 = smov %s2336_s21 }
 0x522   : > { %s2348_s16 = smov %s2339_s17  ;;  %s2349_s17 = smov %s2340_s24 }
 0x525   :  { %792 = vsyncpa [#allocation4], 1 }
 0x526   :  { %794 = vsyncpa [#allocation4 + $0x1], 1 }
 0x527   :  { %795 = vsyncpa [#allocation7], 1 }
 0x528   :  { %796 = vsyncpa [#allocation10], 1 }
 0x529   :  { %797 = vsyncpa [#allocation13], 1 }
 0x52a   :  { %798 = vsyncpa [#allocation5], 1 }
 0x52b   :  { %800 = vsyncpa [#allocation5 + $0x1], 1 }

</bundles_post_ra>
